<compile_context>
chip_gen: v5e
topology: v5e:2x2
jax: 0.10.0
libtpu: 0.0.40
codegen_flags: <defaults>
</compile_context>

<pallas_src>
import math

import jax
import jax.numpy as jnp
import numpy as np
from jax.experimental import pallas as pl
from jax.experimental.pallas import tpu as pltpu

_BN_EPS = 1e-5
_TILE_M = 512                       # rows per grid step (multiple of 16)
_VMEM_LIMIT = 32 * 1024 * 1024      # safe scoped-VMEM budget on v5e/v6e/v7x


def _round_up(x, m):
    return (x + m - 1) // m * m


def _fast_mish(y):
    """y * tanh(softplus(y)) == y * (t^2+2t)/(t^2+2t+2),  t = e^y (clamped)."""
    t = jnp.exp(jnp.minimum(y, 20.0))
    num = t * (t + 2.0)
    return y * (num * pl.reciprocal(num + 2.0, approx=True))


# ----------------------------------------------------------------------------
# Kernel 1: fused GEMM (im2col conv) + folded-BN + fast Mish (+ residual)
# ----------------------------------------------------------------------------
def _make_conv_bn_mish_kernel(has_residual):
    def kernel(*refs):
        if has_residual:
            taps_ref, w_ref, scale_ref, bias_ref, res_ref, out_ref = refs
        else:
            taps_ref, w_ref, scale_ref, bias_ref, out_ref = refs

        acc = jnp.dot(taps_ref[...], w_ref[...],
                      preferred_element_type=jnp.float32)
        y = _fast_mish(acc * scale_ref[...] + bias_ref[...])
        if has_residual:
            y = y + res_ref[...]
        out_ref[...] = y.astype(out_ref.dtype)

    return kernel


def _conv_bn_mish(taps, w_flat, scale, bias, residual=None):
    """taps: (M, K) bf16, w_flat: (K, Cout) bf16, scale/bias: (1, Cout) f32,
    residual: (M, Cout) f32 or None.  Returns (M, Cout) f32."""
    m, k = taps.shape
    cout = w_flat.shape[-1]

    tile_m = min(_TILE_M, _round_up(m, 16))
    m_pad = _round_up(m, tile_m)
    if m_pad != m:
        taps = jnp.pad(taps, ((0, m_pad - m), (0, 0)))
        if residual is not None:
            residual = jnp.pad(residual, ((0, m_pad - m), (0, 0)))

    inputs = [taps, w_flat, scale, bias]
    in_specs = [
        pl.BlockSpec((tile_m, k), lambda i: (i, 0)),     # M-tiled taps
        pl.BlockSpec((k, cout), lambda i: (0, 0)),       # full weights
        pl.BlockSpec((1, cout), lambda i: (0, 0)),       # BN scale
        pl.BlockSpec((1, cout), lambda i: (0, 0)),       # BN bias
    ]
    if residual is not None:
        inputs.append(residual)
        in_specs.append(pl.BlockSpec((tile_m, cout), lambda i: (i, 0)))

    res_bytes = m_pad * cout * 4 if residual is not None else 0
    cost = pl.CostEstimate(
        flops=2 * m_pad * k * cout,
        transcendentals=m_pad * cout,
        bytes_accessed=int(taps.size * 2 + w_flat.size * 2
                           + (scale.size + bias.size) * 4
                           + m_pad * cout * 4 + res_bytes))

    out = pl.pallas_call(
        _make_conv_bn_mish_kernel(residual is not None),
        out_shape=jax.ShapeDtypeStruct((m_pad, cout), jnp.float32),
        grid=(m_pad // tile_m,),
        in_specs=in_specs,
        out_specs=pl.BlockSpec((tile_m, cout), lambda i: (i, 0)),
        compiler_params=pltpu.CompilerParams(
            dimension_semantics=("parallel",),
            vmem_limit_bytes=_VMEM_LIMIT),
        cost_estimate=cost,
    )(*inputs)

    if m_pad != m:
        out = out[:m]
    return out


# ----------------------------------------------------------------------------
# Kernel 2: fused tail = blocks_out 1x1 conv -> Mish -> concat -> concat_conv
#           (concat expressed as two accumulated MXU dots; no HBM round-trip)
# ----------------------------------------------------------------------------
def _tail_kernel(x1_ref, x0_ref, wbo_ref, sbo_ref, bbo_ref,
                 wct_ref, wcb_ref, sc_ref, bc_ref, out_ref):
    # blocks_out: 1x1 conv + BN + Mish on x1
    acc1 = jnp.dot(x1_ref[...], wbo_ref[...], preferred_element_type=jnp.float32)
    y1 = _fast_mish(acc1 * sbo_ref[...] + bbo_ref[...])
    # concat_conv on cat([y1, x0]): two dots accumulated into one f32 acc
    acc = jnp.dot(y1.astype(jnp.bfloat16), wct_ref[...],
                  preferred_element_type=jnp.float32)
    acc = acc + jnp.dot(x0_ref[...], wcb_ref[...],
                        preferred_element_type=jnp.float32)
    y = _fast_mish(acc * sc_ref[...] + bc_ref[...])
    out_ref[...] = y.astype(out_ref.dtype)


def _tail_fused(x1, x0, t):
    """x1: (M, C1) bf16 (after resblocks), x0: (M, C0) bf16 (split0 output).
    Returns (M, Cout) f32 = concat_conv(cat([blocks_out(x1), x0]))."""
    m, c1 = x1.shape
    c0 = x0.shape[-1]
    c_bo = t["w_bo"].shape[-1]
    cout = t["w_cat_top"].shape[-1]

    tile_m = min(_TILE_M, _round_up(m, 16))
    m_pad = _round_up(m, tile_m)
    if m_pad != m:
        x1 = jnp.pad(x1, ((0, m_pad - m), (0, 0)))
        x0 = jnp.pad(x0, ((0, m_pad - m), (0, 0)))

    cost = pl.CostEstimate(
        flops=2 * m_pad * (c1 * c_bo + c_bo * cout + c0 * cout),
        transcendentals=m_pad * (c_bo + cout),
        bytes_accessed=int(x1.size * 2 + x0.size * 2
                           + (t["w_bo"].size + t["w_cat_top"].size
                              + t["w_cat_bot"].size) * 2
                           + (t["scale_bo"].size + t["bias_bo"].size
                              + t["scale_cat"].size + t["bias_cat"].size) * 4
                           + m_pad * cout * 4))

    out = pl.pallas_call(
        _tail_kernel,
        out_shape=jax.ShapeDtypeStruct((m_pad, cout), jnp.float32),
        grid=(m_pad // tile_m,),
        in_specs=[
            pl.BlockSpec((tile_m, c1), lambda i: (i, 0)),
            pl.BlockSpec((tile_m, c0), lambda i: (i, 0)),
            pl.BlockSpec((c1, c_bo), lambda i: (0, 0)),
            pl.BlockSpec((1, c_bo), lambda i: (0, 0)),
            pl.BlockSpec((1, c_bo), lambda i: (0, 0)),
            pl.BlockSpec((c_bo, cout), lambda i: (0, 0)),
            pl.BlockSpec((c0, cout), lambda i: (0, 0)),
            pl.BlockSpec((1, cout), lambda i: (0, 0)),
            pl.BlockSpec((1, cout), lambda i: (0, 0)),
        ],
        out_specs=pl.BlockSpec((tile_m, cout), lambda i: (i, 0)),
        compiler_params=pltpu.CompilerParams(
            dimension_semantics=("parallel",),
            vmem_limit_bytes=_VMEM_LIMIT),
        cost_estimate=cost,
    )(x1, x0, t["w_bo"], t["scale_bo"], t["bias_bo"],
      t["w_cat_top"], t["w_cat_bot"], t["scale_cat"], t["bias_cat"])

    if m_pad != m:
        out = out[:m]
    return out


# ----------------------------------------------------------------------------
# Plain-JAX glue: im2col packing (single fused (M, K) tensor, bf16)
# ----------------------------------------------------------------------------
def _im2col(x, ksize, stride):
    n, h, w, c = x.shape
    if ksize == 1 and stride == 1:
        return x.reshape(n * h * w, c), (n, h, w)
    pad = ksize // 2
    xp = jnp.pad(x, ((0, 0), (pad, pad), (pad, pad), (0, 0)))
    ho = (h + 2 * pad - ksize) // stride + 1
    wo = (w + 2 * pad - ksize) // stride + 1
    cols = []
    for di in range(ksize):
        for dj in range(ksize):
            cols.append(
                xp[:, di:di + stride * ho:stride, dj:dj + stride * wo:stride, :])
    taps = jnp.stack(cols, axis=-2)                 # (n, ho, wo, k*k, c)
    return taps.reshape(n * ho * wo, ksize * ksize * c), (n, ho, wo)


# ----------------------------------------------------------------------------
# Module parameter init + apply (BasicConv / Resblock / Resblock_body)
# ----------------------------------------------------------------------------
def init_basic_conv(key, cin, cout, ksize, stride=1):
    k_w, k_g, k_b, k_m, k_v = jax.random.split(key, 5)
    fan_in = cin * ksize * ksize
    w = jax.random.normal(k_w, (ksize * ksize, cin, cout),
                          jnp.float32) / math.sqrt(fan_in)
    gamma = 1.0 + 0.1 * jax.random.normal(k_g, (cout,), jnp.float32)
    beta = 0.1 * jax.random.normal(k_b, (cout,), jnp.float32)
    mean = 0.1 * jax.random.normal(k_m, (cout,), jnp.float32)
    var = 1.0 + 0.1 * jnp.abs(jax.random.normal(k_v, (cout,), jnp.float32))
    scale = gamma / jnp.sqrt(var + _BN_EPS)
    bias = beta - mean * scale
    return dict(w=w,                                                    # f32, for reference
                w_flat=w.reshape(ksize * ksize * cin, cout).astype(jnp.bfloat16),
                scale=scale.reshape(1, cout), bias=bias.reshape(1, cout),
                ksize=ksize, stride=stride)


def basic_conv_apply(p, x, residual=None):
    taps, (n, ho, wo) = _im2col(x.astype(jnp.bfloat16), p["ksize"], p["stride"])
    cout = p["w_flat"].shape[-1]
    res_flat = None
    if residual is not None:
        res_flat = residual.reshape(n * ho * wo, cout)
    out = _conv_bn_mish(taps, p["w_flat"], p["scale"], p["bias"], res_flat)
    return out.reshape(n, ho, wo, cout)


def init_resblock(key, channels, hidden_channels=None):
    hidden = channels if hidden_channels is None else hidden_channels
    k1, k2 = jax.random.split(key)
    return dict(c1=init_basic_conv(k1, channels, hidden, 1),
                c2=init_basic_conv(k2, hidden, channels, 3))


def resblock_apply(p, x):
    h = basic_conv_apply(p["c1"], x)
    # residual add fused into the second conv's kernel
    return basic_conv_apply(p["c2"], h, residual=x)


def init_resblock_body(key, in_channels, out_channels, num_blocks, first):
    keys = jax.random.split(key, 5 + num_blocks)
    p = dict(first=first)
    p["downsample"] = init_basic_conv(keys[0], in_channels, out_channels, 3,
                                      stride=2)
    if first:
        p["split0"] = init_basic_conv(keys[1], out_channels, out_channels, 1)
        p["split1"] = init_basic_conv(keys[2], out_channels, out_channels, 1)
        p["blocks"] = [init_resblock(keys[5], out_channels, out_channels // 2)]
        p["blocks_out"] = init_basic_conv(keys[3], out_channels, out_channels, 1)
        p["concat"] = init_basic_conv(keys[4], out_channels * 2, out_channels, 1)
    else:
        half = out_channels // 2
        p["split0"] = init_basic_conv(keys[1], out_channels, half, 1)
        p["split1"] = init_basic_conv(keys[2], out_channels, half, 1)
        p["blocks"] = [init_resblock(keys[5 + i], half)
                       for i in range(num_blocks)]
        p["blocks_out"] = init_basic_conv(keys[3], half, half, 1)
        p["concat"] = init_basic_conv(keys[4], out_channels, out_channels, 1)

    # --- precomputed fused parameters -------------------------------------
    # (a) split_conv1 / split_conv0 fused into one GEMM: columns [x1 | x0]
    p["split_fused"] = dict(
        w_flat=jnp.concatenate([p["split1"]["w_flat"], p["split0"]["w_flat"]],
                               axis=-1),
        scale=jnp.concatenate([p["split1"]["scale"], p["split0"]["scale"]],
                              axis=-1),
        bias=jnp.concatenate([p["split1"]["bias"], p["split0"]["bias"]],
                             axis=-1))
    # (b) tail = blocks_out + concat_conv, with concat_conv weights split by
    #     input-channel group (rows [:c_bo] act on x1-path, rest on x0).
    c_bo = p["blocks_out"]["w_flat"].shape[-1]
    p["tail"] = dict(
        w_bo=p["blocks_out"]["w_flat"],
        scale_bo=p["blocks_out"]["scale"], bias_bo=p["blocks_out"]["bias"],
        w_cat_top=p["concat"]["w_flat"][:c_bo],
        w_cat_bot=p["concat"]["w_flat"][c_bo:],
        scale_cat=p["concat"]["scale"], bias_cat=p["concat"]["bias"])
    return p


def resblock_body_apply(p, x):
    x = basic_conv_apply(p["downsample"], x)
    n, h, w, _ = x.shape

    # Fused split: ONE 1x1 GEMM producing [x1 | x0] along the lane axis.
    xf = x.astype(jnp.bfloat16).reshape(n * h * w, -1)
    sp = p["split_fused"]
    both = _conv_bn_mish(xf, sp["w_flat"], sp["scale"], sp["bias"])
    c1 = p["split1"]["w_flat"].shape[-1]
    x1 = both[:, :c1].reshape(n, h, w, c1)
    x0_flat = both[:, c1:]                         # stays flat; tail consumes it

    for bp in p["blocks"]:
        x1 = resblock_apply(bp, x1)

    # Fused tail: blocks_out conv + concat + concat_conv in ONE kernel.
    x1_flat = x1.reshape(n * h * w, -1).astype(jnp.bfloat16)
    out = _tail_fused(x1_flat, x0_flat.astype(jnp.bfloat16), p["tail"])
    cout = p["tail"]["scale_cat"].shape[-1]
    return out.reshape(n, h, w, cout)


# ----------------------------------------------------------------------------
# Pure-JAX reference (same bf16 matmul inputs; exact tanh(softplus) Mish;
# NON-fused topology, so it also checks the split/tail fusions)
# ----------------------------------------------------------------------------
def _ref_basic_conv(p, x, residual=None):
    k = p["ksize"]
    pad = k // 2
    cin, cout = p["w"].shape[1], p["w"].shape[2]
    w = p["w"].reshape(k, k, cin, cout).astype(jnp.bfloat16)
    y = jax.lax.conv_general_dilated(
        x.astype(jnp.bfloat16), w, (p["stride"], p["stride"]),
        [(pad, pad), (pad, pad)],
        dimension_numbers=("NHWC", "HWIO", "NHWC"),
        preferred_element_type=jnp.float32)
    y = y * p["scale"].reshape(1, 1, 1, -1) + p["bias"].reshape(1, 1, 1, -1)
    y = y * jnp.tanh(jax.nn.softplus(y))
    if residual is not None:
        y = y + residual
    return y


def _ref_resblock(p, x):
    h = _ref_basic_conv(p["c1"], x)
    return _ref_basic_conv(p["c2"], h, residual=x)


def ref_resblock_body(p, x):
    x = _ref_basic_conv(p["downsample"], x)
    x0 = _ref_basic_conv(p["split0"], x)
    x1 = _ref_basic_conv(p["split1"], x)
    for bp in p["blocks"]:
        x1 = _ref_resblock(bp, x1)
    x1 = _ref_basic_conv(p["blocks_out"], x1)
    x = jnp.concatenate([x1, x0], axis=-1)
    return _ref_basic_conv(p["concat"], x)


# ----------------------------------------------------------------------------
if __name__ == "__main__":
    key = jax.random.PRNGKey(0)
    k_param, k_x = jax.random.split(key)

    # Resblock_body(in_channels=4, out_channels=8, num_blocks=2, first=False)
    in_channels, out_channels, num_blocks, first = 4, 8, 2, False
    params = init_resblock_body(k_param, in_channels, out_channels,
                                num_blocks, first)

    # PyTorch input would be NCHW (2, 4, 16, 16); kernel layout is NHWC.
    x_nchw = jax.random.normal(k_x, (2, in_channels, 16, 16), jnp.float32)
    x = jnp.transpose(x_nchw, (0, 2, 3, 1))  # -> (2, 16, 16, 4) NHWC

    fwd = jax.jit(lambda xx: resblock_body_apply(params, xx))
    ref_fwd = jax.jit(lambda xx: ref_resblock_body(params, xx))

    out = jax.block_until_ready(fwd(x))
    ref = jax.block_until_ready(ref_fwd(x))

    assert out.shape == (2, 8, 8, out_channels), out.shape
    # Tolerance covers the approx-reciprocal fast-Mish path (rel err ~2^-12
    # per layer) on top of identical bf16 matmul inputs.
    np.testing.assert_allclose(np.asarray(out), np.asarray(ref),
                               rtol=1e-2, atol=1e-2)
    print("KERNEL_OK")
</pallas_src>

<mosaic_0001>
module attributes {stable_mosaic.version = 11 : i64} {
  func.func @kernel(%arg0: i32, %arg1: memref<128x8xbf16, #tpu.memory_space<vmem>>, %arg2: memref<8x8xbf16, #tpu.memory_space<vmem>>, %arg3: memref<1x8xf32, #tpu.memory_space<vmem>>, %arg4: memref<1x8xf32, #tpu.memory_space<vmem>>, %arg5: memref<128x8xf32, #tpu.memory_space<vmem>>) attributes {dimension_semantics = [#tpu.dimension_semantics<parallel>], iteration_bounds = array<i64: 1>, scalar_prefetch = 0 : i64, scratch_operands = 0 : i64, tpu.core_type = #tpu.core_type<tc>, window_params = [{transform_indices = @transform_0, window_bounds = array<i64: 128, 8>}, {pipeline_mode = #tpu.pipeline_mode<synchronous>, transform_indices = @transform_1, window_bounds = array<i64: 8, 8>}, {pipeline_mode = #tpu.pipeline_mode<synchronous>, transform_indices = @transform_2, window_bounds = array<i64: 1, 8>}, {pipeline_mode = #tpu.pipeline_mode<synchronous>, transform_indices = @transform_3, window_bounds = array<i64: 1, 8>}, {transform_indices = @transform_4, window_bounds = array<i64: 128, 8>}]} {
    %c0 = arith.constant 0 : index
    %c0_0 = arith.constant 0 : index
    %0 = vector.load %arg1[%c0, %c0_0] : memref<128x8xbf16, #tpu.memory_space<vmem>>, vector<128x8xbf16>
    %c0_1 = arith.constant 0 : index
    %c0_2 = arith.constant 0 : index
    %1 = vector.load %arg2[%c0_1, %c0_2] : memref<8x8xbf16, #tpu.memory_space<vmem>>, vector<8x8xbf16>
    %cst = arith.constant dense<0.000000e+00> : vector<128x8xf32>
    %2 = tpu.matmul %0, %1, %cst {dimension_numbers = #tpu.dot_dimension_numbers<[1], [0], [0], [1], [0, 0, 1, 1], [], []>} : vector<128x8xbf16>, vector<8x8xbf16>, vector<128x8xf32> -> vector<128x8xf32>
    %c0_3 = arith.constant 0 : index
    %c0_4 = arith.constant 0 : index
    %3 = vector.load %arg3[%c0_3, %c0_4] : memref<1x8xf32, #tpu.memory_space<vmem>>, vector<1x8xf32>
    %4 = vector.broadcast %3 : vector<1x8xf32> to vector<128x8xf32>
    %5 = arith.mulf %2, %4 : vector<128x8xf32>
    %c0_5 = arith.constant 0 : index
    %c0_6 = arith.constant 0 : index
    %6 = vector.load %arg4[%c0_5, %c0_6] : memref<1x8xf32, #tpu.memory_space<vmem>>, vector<1x8xf32>
    %7 = vector.broadcast %6 : vector<1x8xf32> to vector<128x8xf32>
    %8 = arith.addf %5, %7 : vector<128x8xf32>
    %cst_7 = arith.constant 2.000000e+01 : f32
    %9 = vector.broadcast %cst_7 : f32 to vector<128x8xf32>
    %10 = arith.minimumf %8, %9 : vector<128x8xf32>
    %11 = math.exp %10 : vector<128x8xf32>
    %cst_8 = arith.constant 2.000000e+00 : f32
    %12 = vector.broadcast %cst_8 : f32 to vector<128x8xf32>
    %13 = arith.addf %11, %12 : vector<128x8xf32>
    %14 = arith.mulf %11, %13 : vector<128x8xf32>
    %cst_9 = arith.constant 2.000000e+00 : f32
    %15 = vector.broadcast %cst_9 : f32 to vector<128x8xf32>
    %16 = arith.addf %14, %15 : vector<128x8xf32>
    %17 = tpu.reciprocal %16 {approx = true} : vector<128x8xf32> -> vector<128x8xf32>
    %18 = arith.mulf %14, %17 : vector<128x8xf32>
    %19 = arith.mulf %8, %18 : vector<128x8xf32>
    %c0_10 = arith.constant 0 : index
    %c0_11 = arith.constant 0 : index
    %20 = vector.load %arg5[%c0_10, %c0_11] : memref<128x8xf32, #tpu.memory_space<vmem>>, vector<128x8xf32>
    tpu.vector_store %arg5[%c0_10, %c0_11], %19 {strides = array<i32>} : memref<128x8xf32, #tpu.memory_space<vmem>>, vector<128x8xf32>,
    return
  }
  func.func @transform_0(%arg0: i32) -> (i32, i32) {
    %c0_i32 = arith.constant 0 : i32
    %c0_i32_0 = arith.constant 0 : i32
    return %arg0, %c0_i32 : i32, i32
  }
  func.func @transform_1(%arg0: i32) -> (i32, i32) {
    %c0_i32 = arith.constant 0 : i32
    %c0_i32_0 = arith.constant 0 : i32
    %c0_i32_1 = arith.constant 0 : i32
    return %c0_i32, %c0_i32_0 : i32, i32
  }
  func.func @transform_2(%arg0: i32) -> (i32, i32) {
    %c0_i32 = arith.constant 0 : i32
    %c0_i32_0 = arith.constant 0 : i32
    %c0_i32_1 = arith.constant 0 : i32
    return %c0_i32, %c0_i32_0 : i32, i32
  }
  func.func @transform_3(%arg0: i32) -> (i32, i32) {
    %c0_i32 = arith.constant 0 : i32
    %c0_i32_0 = arith.constant 0 : i32
    %c0_i32_1 = arith.constant 0 : i32
    return %c0_i32, %c0_i32_0 : i32, i32
  }
  func.func @transform_4(%arg0: i32) -> (i32, i32) {
    %c0_i32 = arith.constant 0 : i32
    %c0_i32_0 = arith.constant 0 : i32
    return %arg0, %c0_i32 : i32, i32
  }
}

module attributes {stable_mosaic.version = 11 : i64} {
  func.func @kernel(%arg0: i32, %arg1: memref<128x36xbf16, #tpu.memory_space<vmem>>, %arg2: memref<36x8xbf16, #tpu.memory_space<vmem>>, %arg3: memref<1x8xf32, #tpu.memory_space<vmem>>, %arg4: memref<1x8xf32, #tpu.memory_space<vmem>>, %arg5: memref<128x8xf32, #tpu.memory_space<vmem>>) attributes {dimension_semantics = [#tpu.dimension_semantics<parallel>], iteration_bounds = array<i64: 1>, scalar_prefetch = 0 : i64, scratch_operands = 0 : i64, tpu.core_type = #tpu.core_type<tc>, window_params = [{transform_indices = @transform_0, window_bounds = array<i64: 128, 36>}, {pipeline_mode = #tpu.pipeline_mode<synchronous>, transform_indices = @transform_1, window_bounds = array<i64: 36, 8>}, {pipeline_mode = #tpu.pipeline_mode<synchronous>, transform_indices = @transform_2, window_bounds = array<i64: 1, 8>}, {pipeline_mode = #tpu.pipeline_mode<synchronous>, transform_indices = @transform_3, window_bounds = array<i64: 1, 8>}, {transform_indices = @transform_4, window_bounds = array<i64: 128, 8>}]} {
    %c0 = arith.constant 0 : index
    %c0_0 = arith.constant 0 : index
    %0 = vector.load %arg1[%c0, %c0_0] : memref<128x36xbf16, #tpu.memory_space<vmem>>, vector<128x36xbf16>
    %c0_1 = arith.constant 0 : index
    %c0_2 = arith.constant 0 : index
    %1 = vector.load %arg2[%c0_1, %c0_2] : memref<36x8xbf16, #tpu.memory_space<vmem>>, vector<36x8xbf16>
    %cst = arith.constant dense<0.000000e+00> : vector<128x8xf32>
    %2 = tpu.matmul %0, %1, %cst {dimension_numbers = #tpu.dot_dimension_numbers<[1], [0], [0], [1], [0, 0, 1, 1], [], []>} : vector<128x36xbf16>, vector<36x8xbf16>, vector<128x8xf32> -> vector<128x8xf32>
    %c0_3 = arith.constant 0 : index
    %c0_4 = arith.constant 0 : index
    %3 = vector.load %arg3[%c0_3, %c0_4] : memref<1x8xf32, #tpu.memory_space<vmem>>, vector<1x8xf32>
    %4 = vector.broadcast %3 : vector<1x8xf32> to vector<128x8xf32>
    %5 = arith.mulf %2, %4 : vector<128x8xf32>
    %c0_5 = arith.constant 0 : index
    %c0_6 = arith.constant 0 : index
    %6 = vector.load %arg4[%c0_5, %c0_6] : memref<1x8xf32, #tpu.memory_space<vmem>>, vector<1x8xf32>
    %7 = vector.broadcast %6 : vector<1x8xf32> to vector<128x8xf32>
    %8 = arith.addf %5, %7 : vector<128x8xf32>
    %cst_7 = arith.constant 2.000000e+01 : f32
    %9 = vector.broadcast %cst_7 : f32 to vector<128x8xf32>
    %10 = arith.minimumf %8, %9 : vector<128x8xf32>
    %11 = math.exp %10 : vector<128x8xf32>
    %cst_8 = arith.constant 2.000000e+00 : f32
    %12 = vector.broadcast %cst_8 : f32 to vector<128x8xf32>
    %13 = arith.addf %11, %12 : vector<128x8xf32>
    %14 = arith.mulf %11, %13 : vector<128x8xf32>
    %cst_9 = arith.constant 2.000000e+00 : f32
    %15 = vector.broadcast %cst_9 : f32 to vector<128x8xf32>
    %16 = arith.addf %14, %15 : vector<128x8xf32>
    %17 = tpu.reciprocal %16 {approx = true} : vector<128x8xf32> -> vector<128x8xf32>
    %18 = arith.mulf %14, %17 : vector<128x8xf32>
    %19 = arith.mulf %8, %18 : vector<128x8xf32>
    %c0_10 = arith.constant 0 : index
    %c0_11 = arith.constant 0 : index
    %20 = vector.load %arg5[%c0_10, %c0_11] : memref<128x8xf32, #tpu.memory_space<vmem>>, vector<128x8xf32>
    tpu.vector_store %arg5[%c0_10, %c0_11], %19 {strides = array<i32>} : memref<128x8xf32, #tpu.memory_space<vmem>>, vector<128x8xf32>,
    return
  }
  func.func @transform_0(%arg0: i32) -> (i32, i32) {
    %c0_i32 = arith.constant 0 : i32
    %c0_i32_0 = arith.constant 0 : i32
    return %arg0, %c0_i32 : i32, i32
  }
  func.func @transform_1(%arg0: i32) -> (i32, i32) {
    %c0_i32 = arith.constant 0 : i32
    %c0_i32_0 = arith.constant 0 : i32
    %c0_i32_1 = arith.constant 0 : i32
    return %c0_i32, %c0_i32_0 : i32, i32
  }
  func.func @transform_2(%arg0: i32) -> (i32, i32) {
    %c0_i32 = arith.constant 0 : i32
    %c0_i32_0 = arith.constant 0 : i32
    %c0_i32_1 = arith.constant 0 : i32
    return %c0_i32, %c0_i32_0 : i32, i32
  }
  func.func @transform_3(%arg0: i32) -> (i32, i32) {
    %c0_i32 = arith.constant 0 : i32
    %c0_i32_0 = arith.constant 0 : i32
    %c0_i32_1 = arith.constant 0 : i32
    return %c0_i32, %c0_i32_0 : i32, i32
  }
  func.func @transform_4(%arg0: i32) -> (i32, i32) {
    %c0_i32 = arith.constant 0 : i32
    %c0_i32_0 = arith.constant 0 : i32
    return %arg0, %c0_i32 : i32, i32
  }
}

module attributes {stable_mosaic.version = 11 : i64} {
  func.func @kernel(%arg0: i32, %arg1: memref<128x4xbf16, #tpu.memory_space<vmem>>, %arg2: memref<4x4xbf16, #tpu.memory_space<vmem>>, %arg3: memref<1x4xf32, #tpu.memory_space<vmem>>, %arg4: memref<1x4xf32, #tpu.memory_space<vmem>>, %arg5: memref<128x4xf32, #tpu.memory_space<vmem>>) attributes {dimension_semantics = [#tpu.dimension_semantics<parallel>], iteration_bounds = array<i64: 1>, scalar_prefetch = 0 : i64, scratch_operands = 0 : i64, tpu.core_type = #tpu.core_type<tc>, window_params = [{transform_indices = @transform_0, window_bounds = array<i64: 128, 4>}, {pipeline_mode = #tpu.pipeline_mode<synchronous>, transform_indices = @transform_1, window_bounds = array<i64: 4, 4>}, {pipeline_mode = #tpu.pipeline_mode<synchronous>, transform_indices = @transform_2, window_bounds = array<i64: 1, 4>}, {pipeline_mode = #tpu.pipeline_mode<synchronous>, transform_indices = @transform_3, window_bounds = array<i64: 1, 4>}, {transform_indices = @transform_4, window_bounds = array<i64: 128, 4>}]} {
    %c0 = arith.constant 0 : index
    %c0_0 = arith.constant 0 : index
    %0 = vector.load %arg1[%c0, %c0_0] : memref<128x4xbf16, #tpu.memory_space<vmem>>, vector<128x4xbf16>
    %c0_1 = arith.constant 0 : index
    %c0_2 = arith.constant 0 : index
    %1 = vector.load %arg2[%c0_1, %c0_2] : memref<4x4xbf16, #tpu.memory_space<vmem>>, vector<4x4xbf16>
    %cst = arith.constant dense<0.000000e+00> : vector<128x4xf32>
    %2 = tpu.matmul %0, %1, %cst {dimension_numbers = #tpu.dot_dimension_numbers<[1], [0], [0], [1], [0, 0, 1, 1], [], []>} : vector<128x4xbf16>, vector<4x4xbf16>, vector<128x4xf32> -> vector<128x4xf32>
    %c0_3 = arith.constant 0 : index
    %c0_4 = arith.constant 0 : index
    %3 = vector.load %arg3[%c0_3, %c0_4] : memref<1x4xf32, #tpu.memory_space<vmem>>, vector<1x4xf32>
    %4 = vector.broadcast %3 : vector<1x4xf32> to vector<128x4xf32>
    %5 = arith.mulf %2, %4 : vector<128x4xf32>
    %c0_5 = arith.constant 0 : index
    %c0_6 = arith.constant 0 : index
    %6 = vector.load %arg4[%c0_5, %c0_6] : memref<1x4xf32, #tpu.memory_space<vmem>>, vector<1x4xf32>
    %7 = vector.broadcast %6 : vector<1x4xf32> to vector<128x4xf32>
    %8 = arith.addf %5, %7 : vector<128x4xf32>
    %cst_7 = arith.constant 2.000000e+01 : f32
    %9 = vector.broadcast %cst_7 : f32 to vector<128x4xf32>
    %10 = arith.minimumf %8, %9 : vector<128x4xf32>
    %11 = math.exp %10 : vector<128x4xf32>
    %cst_8 = arith.constant 2.000000e+00 : f32
    %12 = vector.broadcast %cst_8 : f32 to vector<128x4xf32>
    %13 = arith.addf %11, %12 : vector<128x4xf32>
    %14 = arith.mulf %11, %13 : vector<128x4xf32>
    %cst_9 = arith.constant 2.000000e+00 : f32
    %15 = vector.broadcast %cst_9 : f32 to vector<128x4xf32>
    %16 = arith.addf %14, %15 : vector<128x4xf32>
    %17 = tpu.reciprocal %16 {approx = true} : vector<128x4xf32> -> vector<128x4xf32>
    %18 = arith.mulf %14, %17 : vector<128x4xf32>
    %19 = arith.mulf %8, %18 : vector<128x4xf32>
    %c0_10 = arith.constant 0 : index
    %c0_11 = arith.constant 0 : index
    %20 = vector.load %arg5[%c0_10, %c0_11] : memref<128x4xf32, #tpu.memory_space<vmem>>, vector<128x4xf32>
    tpu.vector_store %arg5[%c0_10, %c0_11], %19 {strides = array<i32>} : memref<128x4xf32, #tpu.memory_space<vmem>>, vector<128x4xf32>,
    return
  }
  func.func @transform_0(%arg0: i32) -> (i32, i32) {
    %c0_i32 = arith.constant 0 : i32
    %c0_i32_0 = arith.constant 0 : i32
    return %arg0, %c0_i32 : i32, i32
  }
  func.func @transform_1(%arg0: i32) -> (i32, i32) {
    %c0_i32 = arith.constant 0 : i32
    %c0_i32_0 = arith.constant 0 : i32
    %c0_i32_1 = arith.constant 0 : i32
    return %c0_i32, %c0_i32_0 : i32, i32
  }
  func.func @transform_2(%arg0: i32) -> (i32, i32) {
    %c0_i32 = arith.constant 0 : i32
    %c0_i32_0 = arith.constant 0 : i32
    %c0_i32_1 = arith.constant 0 : i32
    return %c0_i32, %c0_i32_0 : i32, i32
  }
  func.func @transform_3(%arg0: i32) -> (i32, i32) {
    %c0_i32 = arith.constant 0 : i32
    %c0_i32_0 = arith.constant 0 : i32
    %c0_i32_1 = arith.constant 0 : i32
    return %c0_i32, %c0_i32_0 : i32, i32
  }
  func.func @transform_4(%arg0: i32) -> (i32, i32) {
    %c0_i32 = arith.constant 0 : i32
    %c0_i32_0 = arith.constant 0 : i32
    return %arg0, %c0_i32 : i32, i32
  }
}

module attributes {stable_mosaic.version = 11 : i64} {
  func.func @_tail_kernel(%arg0: i32, %arg1: memref<128x4xbf16, #tpu.memory_space<vmem>>, %arg2: memref<128x4xbf16, #tpu.memory_space<vmem>>, %arg3: memref<4x4xbf16, #tpu.memory_space<vmem>>, %arg4: memref<1x4xf32, #tpu.memory_space<vmem>>, %arg5: memref<1x4xf32, #tpu.memory_space<vmem>>, %arg6: memref<4x8xbf16, #tpu.memory_space<vmem>>, %arg7: memref<4x8xbf16, #tpu.memory_space<vmem>>, %arg8: memref<1x8xf32, #tpu.memory_space<vmem>>, %arg9: memref<1x8xf32, #tpu.memory_space<vmem>>, %arg10: memref<128x8xf32, #tpu.memory_space<vmem>>) attributes {dimension_semantics = [#tpu.dimension_semantics<parallel>], iteration_bounds = array<i64: 1>, scalar_prefetch = 0 : i64, scratch_operands = 0 : i64, tpu.core_type = #tpu.core_type<tc>, window_params = [{transform_indices = @transform_0, window_bounds = array<i64: 128, 4>}, {transform_indices = @transform_1, window_bounds = array<i64: 128, 4>}, {pipeline_mode = #tpu.pipeline_mode<synchronous>, transform_indices = @transform_2, window_bounds = array<i64: 4, 4>}, {pipeline_mode = #tpu.pipeline_mode<synchronous>, transform_indices = @transform_3, window_bounds = array<i64: 1, 4>}, {pipeline_mode = #tpu.pipeline_mode<synchronous>, transform_indices = @transform_4, window_bounds = array<i64: 1, 4>}, {pipeline_mode = #tpu.pipeline_mode<synchronous>, transform_indices = @transform_5, window_bounds = array<i64: 4, 8>}, {pipeline_mode = #tpu.pipeline_mode<synchronous>, transform_indices = @transform_6, window_bounds = array<i64: 4, 8>}, {pipeline_mode = #tpu.pipeline_mode<synchronous>, transform_indices = @transform_7, window_bounds = array<i64: 1, 8>}, {pipeline_mode = #tpu.pipeline_mode<synchronous>, transform_indices = @transform_8, window_bounds = array<i64: 1, 8>}, {transform_indices = @transform_9, window_bounds = array<i64: 128, 8>}]} {
    %c0 = arith.constant 0 : index
    %c0_0 = arith.constant 0 : index
    %0 = vector.load %arg1[%c0, %c0_0] : memref<128x4xbf16, #tpu.memory_space<vmem>>, vector<128x4xbf16>
    %c0_1 = arith.constant 0 : index
    %c0_2 = arith.constant 0 : index
    %1 = vector.load %arg3[%c0_1, %c0_2] : memref<4x4xbf16, #tpu.memory_space<vmem>>, vector<4x4xbf16>
    %cst = arith.constant dense<0.000000e+00> : vector<128x4xf32>
    %2 = tpu.matmul %0, %1, %cst {dimension_numbers = #tpu.dot_dimension_numbers<[1], [0], [0], [1], [0, 0, 1, 1], [], []>} : vector<128x4xbf16>, vector<4x4xbf16>, vector<128x4xf32> -> vector<128x4xf32>
    %c0_3 = arith.constant 0 : index
    %c0_4 = arith.constant 0 : index
    %3 = vector.load %arg4[%c0_3, %c0_4] : memref<1x4xf32, #tpu.memory_space<vmem>>, vector<1x4xf32>
    %4 = vector.broadcast %3 : vector<1x4xf32> to vector<128x4xf32>
    %5 = arith.mulf %2, %4 : vector<128x4xf32>
    %c0_5 = arith.constant 0 : index
    %c0_6 = arith.constant 0 : index
    %6 = vector.load %arg5[%c0_5, %c0_6] : memref<1x4xf32, #tpu.memory_space<vmem>>, vector<1x4xf32>
    %7 = vector.broadcast %6 : vector<1x4xf32> to vector<128x4xf32>
    %8 = arith.addf %5, %7 : vector<128x4xf32>
    %cst_7 = arith.constant 2.000000e+01 : f32
    %9 = vector.broadcast %cst_7 : f32 to vector<128x4xf32>
    %10 = arith.minimumf %8, %9 : vector<128x4xf32>
    %11 = math.exp %10 : vector<128x4xf32>
    %cst_8 = arith.constant 2.000000e+00 : f32
    %12 = vector.broadcast %cst_8 : f32 to vector<128x4xf32>
    %13 = arith.addf %11, %12 : vector<128x4xf32>
    %14 = arith.mulf %11, %13 : vector<128x4xf32>
    %cst_9 = arith.constant 2.000000e+00 : f32
    %15 = vector.broadcast %cst_9 : f32 to vector<128x4xf32>
    %16 = arith.addf %14, %15 : vector<128x4xf32>
    %17 = tpu.reciprocal %16 {approx = true} : vector<128x4xf32> -> vector<128x4xf32>
    %18 = arith.mulf %14, %17 : vector<128x4xf32>
    %19 = arith.mulf %8, %18 : vector<128x4xf32>
    %20 = arith.truncf %19 : vector<128x4xf32> to vector<128x4xbf16>
    %c0_10 = arith.constant 0 : index
    %c0_11 = arith.constant 0 : index
    %21 = vector.load %arg6[%c0_10, %c0_11] : memref<4x8xbf16, #tpu.memory_space<vmem>>, vector<4x8xbf16>
    %cst_12 = arith.constant dense<0.000000e+00> : vector<128x8xf32>
    %22 = tpu.matmul %20, %21, %cst_12 {dimension_numbers = #tpu.dot_dimension_numbers<[1], [0], [0], [1], [0, 0, 1, 1], [], []>} : vector<128x4xbf16>, vector<4x8xbf16>, vector<128x8xf32> -> vector<128x8xf32>
    %c0_13 = arith.constant 0 : index
    %c0_14 = arith.constant 0 : index
    %23 = vector.load %arg2[%c0_13, %c0_14] : memref<128x4xbf16, #tpu.memory_space<vmem>>, vector<128x4xbf16>
    %c0_15 = arith.constant 0 : index
    %c0_16 = arith.constant 0 : index
    %24 = vector.load %arg7[%c0_15, %c0_16] : memref<4x8xbf16, #tpu.memory_space<vmem>>, vector<4x8xbf16>
    %cst_17 = arith.constant dense<0.000000e+00> : vector<128x8xf32>
    %25 = tpu.matmul %23, %24, %cst_17 {dimension_numbers = #tpu.dot_dimension_numbers<[1], [0], [0], [1], [0, 0, 1, 1], [], []>} : vector<128x4xbf16>, vector<4x8xbf16>, vector<128x8xf32> -> vector<128x8xf32>
    %26 = arith.addf %22, %25 : vector<128x8xf32>
    %c0_18 = arith.constant 0 : index
    %c0_19 = arith.constant 0 : index
    %27 = vector.load %arg8[%c0_18, %c0_19] : memref<1x8xf32, #tpu.memory_space<vmem>>, vector<1x8xf32>
    %28 = vector.broadcast %27 : vector<1x8xf32> to vector<128x8xf32>
    %29 = arith.mulf %26, %28 : vector<128x8xf32>
    %c0_20 = arith.constant 0 : index
    %c0_21 = arith.constant 0 : index
    %30 = vector.load %arg9[%c0_20, %c0_21] : memref<1x8xf32, #tpu.memory_space<vmem>>, vector<1x8xf32>
    %31 = vector.broadcast %30 : vector<1x8xf32> to vector<128x8xf32>
    %32 = arith.addf %29, %31 : vector<128x8xf32>
    %cst_22 = arith.constant 2.000000e+01 : f32
    %33 = vector.broadcast %cst_22 : f32 to vector<128x8xf32>
    %34 = arith.minimumf %32, %33 : vector<128x8xf32>
    %35 = math.exp %34 : vector<128x8xf32>
    %cst_23 = arith.constant 2.000000e+00 : f32
    %36 = vector.broadcast %cst_23 : f32 to vector<128x8xf32>
    %37 = arith.addf %35, %36 : vector<128x8xf32>
    %38 = arith.mulf %35, %37 : vector<128x8xf32>
    %cst_24 = arith.constant 2.000000e+00 : f32
    %39 = vector.broadcast %cst_24 : f32 to vector<128x8xf32>
    %40 = arith.addf %38, %39 : vector<128x8xf32>
    %41 = tpu.reciprocal %40 {approx = true} : vector<128x8xf32> -> vector<128x8xf32>
    %42 = arith.mulf %38, %41 : vector<128x8xf32>
    %43 = arith.mulf %32, %42 : vector<128x8xf32>
    %c0_25 = arith.constant 0 : index
    %c0_26 = arith.constant 0 : index
    %44 = vector.load %arg10[%c0_25, %c0_26] : memref<128x8xf32, #tpu.memory_space<vmem>>, vector<128x8xf32>
    tpu.vector_store %arg10[%c0_25, %c0_26], %43 {strides = array<i32>} : memref<128x8xf32, #tpu.memory_space<vmem>>, vector<128x8xf32>,
    return
  }
  func.func @transform_0(%arg0: i32) -> (i32, i32) {
    %c0_i32 = arith.constant 0 : i32
    %c0_i32_0 = arith.constant 0 : i32
    return %arg0, %c0_i32 : i32, i32
  }
  func.func @transform_1(%arg0: i32) -> (i32, i32) {
    %c0_i32 = arith.constant 0 : i32
    %c0_i32_0 = arith.constant 0 : i32
    return %arg0, %c0_i32 : i32, i32
  }
  func.func @transform_2(%arg0: i32) -> (i32, i32) {
    %c0_i32 = arith.constant 0 : i32
    %c0_i32_0 = arith.constant 0 : i32
    %c0_i32_1 = arith.constant 0 : i32
    return %c0_i32, %c0_i32_0 : i32, i32
  }
  func.func @transform_3(%arg0: i32) -> (i32, i32) {
    %c0_i32 = arith.constant 0 : i32
    %c0_i32_0 = arith.constant 0 : i32
    %c0_i32_1 = arith.constant 0 : i32
    return %c0_i32, %c0_i32_0 : i32, i32
  }
  func.func @transform_4(%arg0: i32) -> (i32, i32) {
    %c0_i32 = arith.constant 0 : i32
    %c0_i32_0 = arith.constant 0 : i32
    %c0_i32_1 = arith.constant 0 : i32
    return %c0_i32, %c0_i32_0 : i32, i32
  }
  func.func @transform_5(%arg0: i32) -> (i32, i32) {
    %c0_i32 = arith.constant 0 : i32
    %c0_i32_0 = arith.constant 0 : i32
    %c0_i32_1 = arith.constant 0 : i32
    return %c0_i32, %c0_i32_0 : i32, i32
  }
  func.func @transform_6(%arg0: i32) -> (i32, i32) {
    %c0_i32 = arith.constant 0 : i32
    %c0_i32_0 = arith.constant 0 : i32
    %c0_i32_1 = arith.constant 0 : i32
    return %c0_i32, %c0_i32_0 : i32, i32
  }
  func.func @transform_7(%arg0: i32) -> (i32, i32) {
    %c0_i32 = arith.constant 0 : i32
    %c0_i32_0 = arith.constant 0 : i32
    %c0_i32_1 = arith.constant 0 : i32
    return %c0_i32, %c0_i32_0 : i32, i32
  }
  func.func @transform_8(%arg0: i32) -> (i32, i32) {
    %c0_i32 = arith.constant 0 : i32
    %c0_i32_0 = arith.constant 0 : i32
    %c0_i32_1 = arith.constant 0 : i32
    return %c0_i32, %c0_i32_0 : i32, i32
  }
  func.func @transform_9(%arg0: i32) -> (i32, i32) {
    %c0_i32 = arith.constant 0 : i32
    %c0_i32_0 = arith.constant 0 : i32
    return %arg0, %c0_i32 : i32, i32
  }
}

module attributes {stable_mosaic.version = 11 : i64} {
  func.func @kernel(%arg0: i32, %arg1: memref<128x36xbf16, #tpu.memory_space<vmem>>, %arg2: memref<36x4xbf16, #tpu.memory_space<vmem>>, %arg3: memref<1x4xf32, #tpu.memory_space<vmem>>, %arg4: memref<1x4xf32, #tpu.memory_space<vmem>>, %arg5: memref<128x4xf32, #tpu.memory_space<vmem>>, %arg6: memref<128x4xf32, #tpu.memory_space<vmem>>) attributes {dimension_semantics = [#tpu.dimension_semantics<parallel>], iteration_bounds = array<i64: 1>, scalar_prefetch = 0 : i64, scratch_operands = 0 : i64, tpu.core_type = #tpu.core_type<tc>, window_params = [{transform_indices = @transform_0, window_bounds = array<i64: 128, 36>}, {pipeline_mode = #tpu.pipeline_mode<synchronous>, transform_indices = @transform_1, window_bounds = array<i64: 36, 4>}, {pipeline_mode = #tpu.pipeline_mode<synchronous>, transform_indices = @transform_2, window_bounds = array<i64: 1, 4>}, {pipeline_mode = #tpu.pipeline_mode<synchronous>, transform_indices = @transform_3, window_bounds = array<i64: 1, 4>}, {transform_indices = @transform_4, window_bounds = array<i64: 128, 4>}, {transform_indices = @transform_5, window_bounds = array<i64: 128, 4>}]} {
    %c0 = arith.constant 0 : index
    %c0_0 = arith.constant 0 : index
    %0 = vector.load %arg1[%c0, %c0_0] : memref<128x36xbf16, #tpu.memory_space<vmem>>, vector<128x36xbf16>
    %c0_1 = arith.constant 0 : index
    %c0_2 = arith.constant 0 : index
    %1 = vector.load %arg2[%c0_1, %c0_2] : memref<36x4xbf16, #tpu.memory_space<vmem>>, vector<36x4xbf16>
    %cst = arith.constant dense<0.000000e+00> : vector<128x4xf32>
    %2 = tpu.matmul %0, %1, %cst {dimension_numbers = #tpu.dot_dimension_numbers<[1], [0], [0], [1], [0, 0, 1, 1], [], []>} : vector<128x36xbf16>, vector<36x4xbf16>, vector<128x4xf32> -> vector<128x4xf32>
    %c0_3 = arith.constant 0 : index
    %c0_4 = arith.constant 0 : index
    %3 = vector.load %arg3[%c0_3, %c0_4] : memref<1x4xf32, #tpu.memory_space<vmem>>, vector<1x4xf32>
    %4 = vector.broadcast %3 : vector<1x4xf32> to vector<128x4xf32>
    %5 = arith.mulf %2, %4 : vector<128x4xf32>
    %c0_5 = arith.constant 0 : index
    %c0_6 = arith.constant 0 : index
    %6 = vector.load %arg4[%c0_5, %c0_6] : memref<1x4xf32, #tpu.memory_space<vmem>>, vector<1x4xf32>
    %7 = vector.broadcast %6 : vector<1x4xf32> to vector<128x4xf32>
    %8 = arith.addf %5, %7 : vector<128x4xf32>
    %cst_7 = arith.constant 2.000000e+01 : f32
    %9 = vector.broadcast %cst_7 : f32 to vector<128x4xf32>
    %10 = arith.minimumf %8, %9 : vector<128x4xf32>
    %11 = math.exp %10 : vector<128x4xf32>
    %cst_8 = arith.constant 2.000000e+00 : f32
    %12 = vector.broadcast %cst_8 : f32 to vector<128x4xf32>
    %13 = arith.addf %11, %12 : vector<128x4xf32>
    %14 = arith.mulf %11, %13 : vector<128x4xf32>
    %cst_9 = arith.constant 2.000000e+00 : f32
    %15 = vector.broadcast %cst_9 : f32 to vector<128x4xf32>
    %16 = arith.addf %14, %15 : vector<128x4xf32>
    %17 = tpu.reciprocal %16 {approx = true} : vector<128x4xf32> -> vector<128x4xf32>
    %18 = arith.mulf %14, %17 : vector<128x4xf32>
    %19 = arith.mulf %8, %18 : vector<128x4xf32>
    %c0_10 = arith.constant 0 : index
    %c0_11 = arith.constant 0 : index
    %20 = vector.load %arg5[%c0_10, %c0_11] : memref<128x4xf32, #tpu.memory_space<vmem>>, vector<128x4xf32>
    %21 = arith.addf %19, %20 : vector<128x4xf32>
    %c0_12 = arith.constant 0 : index
    %c0_13 = arith.constant 0 : index
    %22 = vector.load %arg6[%c0_12, %c0_13] : memref<128x4xf32, #tpu.memory_space<vmem>>, vector<128x4xf32>
    tpu.vector_store %arg6[%c0_12, %c0_13], %21 {strides = array<i32>} : memref<128x4xf32, #tpu.memory_space<vmem>>, vector<128x4xf32>,
    return
  }
  func.func @transform_0(%arg0: i32) -> (i32, i32) {
    %c0_i32 = arith.constant 0 : i32
    %c0_i32_0 = arith.constant 0 : i32
    return %arg0, %c0_i32 : i32, i32
  }
  func.func @transform_1(%arg0: i32) -> (i32, i32) {
    %c0_i32 = arith.constant 0 : i32
    %c0_i32_0 = arith.constant 0 : i32
    %c0_i32_1 = arith.constant 0 : i32
    return %c0_i32, %c0_i32_0 : i32, i32
  }
  func.func @transform_2(%arg0: i32) -> (i32, i32) {
    %c0_i32 = arith.constant 0 : i32
    %c0_i32_0 = arith.constant 0 : i32
    %c0_i32_1 = arith.constant 0 : i32
    return %c0_i32, %c0_i32_0 : i32, i32
  }
  func.func @transform_3(%arg0: i32) -> (i32, i32) {
    %c0_i32 = arith.constant 0 : i32
    %c0_i32_0 = arith.constant 0 : i32
    %c0_i32_1 = arith.constant 0 : i32
    return %c0_i32, %c0_i32_0 : i32, i32
  }
  func.func @transform_4(%arg0: i32) -> (i32, i32) {
    %c0_i32 = arith.constant 0 : i32
    %c0_i32_0 = arith.constant 0 : i32
    return %arg0, %c0_i32 : i32, i32
  }
  func.func @transform_5(%arg0: i32) -> (i32, i32) {
    %c0_i32 = arith.constant 0 : i32
    %c0_i32_0 = arith.constant 0 : i32
    return %arg0, %c0_i32 : i32, i32
  }
}

</mosaic_0001>

<bundles_post_ra>
// kernel: _lambda_.8
= control target key start
LH: loop header
LB: loop body
LE: loop exit
PB: predicated region body
PF: predicated region fallthrough
CT: control target
= control target key end

     0   :  { %vm100_vm0 = vcmask 1043456   ;;  %vm75_vm1 = vcmask 64512   ;;  %s704_s1 = inlined_call_operand.vmem [shape: bf16[8,8], index: 1, kind: input, shape index: {}]   ;;  %s705_s0 = inlined_call_operand.vmem [shape: bf16[128,8], index: 0, kind: input, shape index: {}]   ;;  %s706_s2 = inlined_call_operand.vmem [shape: f32[1,8], index: 2, kind: input, shape index: {}]   ;;  %s707_s3 = inlined_call_operand.vmem [shape: f32[1,8], index: 3, kind: input, shape index: {}]   ;;  %s708_s4 = inlined_call_operand.vmem [shape: f32[128,8], index: 4, kind: output, shape index: {}]  }
   0x1   :  { %v34_v0 = vld [vmem:[%s704_s1] sm:$0xf]  ;;  %v399_v3 = vld [vmem:[%s705_s0 + $0x10] sm:$0xff]  ;;  %v398_v6 = vld [vmem:[%s705_s0 + $0x8] sm:$0xff] }
   0x2   :  { %v102_v1 = vsel %vm100_vm0, %v34_v0, 0  ;;  %v397_v2 = vld [vmem:[%s705_s0] sm:$0xff]  ;;  %v403_v5 = vld [vmem:[%s705_s0 + $0x30] sm:$0xff]  ;;  %v400_v7 = vld [vmem:[%s705_s0 + $0x18] sm:$0xff] }
   0x3   :  { %111 = vmatpush.bf16.msra.mxu0 %v102_v1  ;;  %405 = vmatpush.bf16.msra.mxu1 %v102_v1  ;;  %v401_v4 = vld [vmem:[%s705_s0 + $0x20] sm:$0xff]  ;;  %v402_v8 = vld [vmem:[%s705_s0 + $0x28] sm:$0xff]  ;;  %v404_v9 = vld [vmem:[%s705_s0 + $0x38] sm:$0xff] }
   0x4   :  { %406 = vmatpush.bf16.msra.mxu2 %v102_v1  ;;  %407 = vmatpush.bf16.msra.mxu3 %v102_v1  ;;  %v537_v10 = vld [vmem:[%s706_s2] ss:$0 sm:$0xff] }
   0x5   :  { %v542_v11 = vld [vmem:[%s707_s3] ss:$0 sm:$0xff] }
   0x6   :  { %389 = vmatmul.msk.bf16.vlgmr.msra.gmra.mxu0 %vm75_vm1, %v397_v2  ;;  %391 = vmatmul.msk.bf16.vlgmr.msra.gmra.mxu1 %vm75_vm1, %v399_v3 }
   0x7   :  { %393 = vmatmul.msk.bf16.vlgmr.msra.gmra.mxu2 %vm75_vm1, %v401_v4  ;;  %395 = vmatmul.msk.bf16.vlgmr.msra.gmra.mxu3 %vm75_vm1, %v403_v5 }
  0x16   :  { %390 = vmatmul.msk.bf16.gmra.mxu0 %vm75_vm1, %v398_v6  ;;  %392 = vmatmul.msk.bf16.gmra.mxu1 %vm75_vm1, %v400_v7 }
  0x17   :  { %394 = vmatmul.msk.bf16.gmra.mxu2 %vm75_vm1, %v402_v8  ;;  %396 = vmatmul.msk.bf16.gmra.mxu3 %vm75_vm1, %v404_v9 }
  0x83   :  { %v113_v12 = vpop.f32.mrf.mxu0  ;;  %v123_v13 = vpop.f32.mrf.mxu1 }
  0x84   :  { %v157_v14 = vmul.f32 %v537_v10, %v113_v12  ;;  %v161_v15 = vmul.f32 %v537_v10, %v123_v13 }
  0x86   :  { %v547_v16 = vadd.f32 %v542_v11, %v157_v14  ;;  %v550_v17 = vadd.f32 %v542_v11, %v161_v15 }
  0x88   :  { %v193_v18 = vmin.f32 %v547_v16, 20.0  ;;  %v197_v19 = vmin.f32 %v550_v17, 20.0 }
  0x8a   :  { %v209_v20 = vmul.f32 1.442695, %v193_v18  ;;  %v217_v21 = vmul.f32 1.442695, %v197_v19  ;;  %v133_v22 = vpop.f32.mrf.mxu2  ;;  %v143_v23 = vpop.f32.mrf.mxu3 }
  0x8b   :  { %v165_v24 = vmul.f32 %v537_v10, %v133_v22  ;;  %v169_v25 = vmul.f32 %v537_v10, %v143_v23  ;;  %v115_v26 = vpop.f32.mrf.mxu0  ;;  %v125_v27 = vpop.f32.mrf.mxu1 }
  0x8c   :  { %410 = vpow2.f32 %v209_v20  ;;  %v158_v28 = vmul.f32 %v537_v10, %v115_v26  ;;  %v162_v29 = vmul.f32 %v537_v10, %v125_v27 }
  0x8d   :  { %412 = vpow2.f32 %v217_v21  ;;  %v559_v30 = vadd.f32 %v542_v11, %v165_v24  ;;  %v562_v31 = vadd.f32 %v542_v11, %v169_v25 }
  0x8e   :  { %v565_v32 = vadd.f32 %v542_v11, %v158_v28  ;;  %v568_v33 = vadd.f32 %v542_v11, %v162_v29 }
  0x8f   :  { %v201_v34 = vmin.f32 %v559_v30, 20.0  ;;  %v205_v35 = vmin.f32 %v562_v31, 20.0 }
  0x90   :  { %v194_v36 = vmin.f32 %v565_v32, 20.0  ;;  %v198_v37 = vmin.f32 %v568_v33, 20.0 }
  0x91   :  { %v225_v38 = vmul.f32 1.442695, %v201_v34  ;;  %v233_v39 = vmul.f32 1.442695, %v205_v35 }
  0x92   :  { %v411_v40 = vpop.eup %410  ;;  %v211_v41 = vmul.f32 1.442695, %v194_v36  ;;  %v219_v42 = vmul.f32 1.442695, %v198_v37  ;;  %v135_v43 = vpop.f32.mrf.mxu2 }
  0x93   :  { %v145_v44 = vpop.f32.mrf.mxu3  ;;  %v413_v45 = vpop.eup %412  ;;  %v241_v46 = vadd.f32 2.0, %v411_v40  ;;  %414 = vpow2.f32 %v225_v38  ;;  %v166_v47 = vmul.f32 %v537_v10, %v135_v43 }
  0x94   :  { %v170_v48 = vmul.f32 %v537_v10, %v145_v44  ;;  %v118_v49 = vpop.f32.mrf.mxu0  ;;  %v128_v50 = vpop.f32.mrf.mxu1  ;;  %v245_v51 = vadd.f32 2.0, %v413_v45  ;;  %416 = vpow2.f32 %v233_v39 }
  0x95   :  { %v159_v52 = vmul.f32 %v537_v10, %v118_v49  ;;  %v163_v53 = vmul.f32 %v537_v10, %v128_v50  ;;  %v257_v54 = vmul.f32 %v411_v40, %v241_v46  ;;  %418 = vpow2.f32 %v211_v41 }
  0x96   :  { %v579_v55 = vadd.f32 %v542_v11, %v166_v47  ;;  %v582_v56 = vadd.f32 %v542_v11, %v170_v48  ;;  %v261_v57 = vmul.f32 %v413_v45, %v245_v51  ;;  %420 = vpow2.f32 %v219_v42 }
  0x97   :  { %v585_v58 = vadd.f32 %v542_v11, %v159_v52  ;;  %v588_v59 = vadd.f32 %v542_v11, %v163_v53  ;;  %v273_v60 = vadd.f32 2.0, %v257_v54 }
  0x98   :  { %v202_v61 = vmin.f32 %v579_v55, 20.0  ;;  %v206_v62 = vmin.f32 %v582_v56, 20.0  ;;  %v277_v63 = vadd.f32 2.0, %v261_v57 }
  0x99   :  { %v195_v0 = vmin.f32 %v585_v58, 20.0  ;;  %v199_v1 = vmin.f32 %v588_v59, 20.0  ;;  %v415_v2 = vpop.eup %414  ;;  %422 = vrcp.f32 %v273_v60 }
  0x9a   :  { %v227_v3 = vmul.f32 1.442695, %v202_v61  ;;  %v235_v4 = vmul.f32 1.442695, %v206_v62  ;;  %v417_v5 = vpop.eup %416  ;;  %424 = vrcp.f32 %v277_v63  ;;  %v249_v6 = vadd.f32 2.0, %v415_v2  ;;  %v138_v9 = vpop.f32.mrf.mxu2 }
  0x9b   :  { %v213_v7 = vmul.f32 1.442695, %v195_v0  ;;  %v221_v8 = vmul.f32 1.442695, %v199_v1  ;;  %v148_v12 = vpop.f32.mrf.mxu3  ;;  %v419_v13 = vpop.eup %418  ;;  %v253_v14 = vadd.f32 2.0, %v417_v5  ;;  %v167_v15 = vmul.f32 %v537_v10, %v138_v9 }
  0x9c   :  { %426 = vpow2.f32 %v227_v3  ;;  %v171_v18 = vmul.f32 %v537_v10, %v148_v12  ;;  %v120_v19 = vpop.f32.mrf.mxu0  ;;  %v421_v20 = vpop.eup %420  ;;  %v265_v21 = vmul.f32 %v415_v2, %v249_v6  ;;  %v242_v22 = vadd.f32 2.0, %v419_v13 }
  0x9d   :  { %428 = vpow2.f32 %v235_v4  ;;  %v160_v23 = vmul.f32 %v537_v10, %v120_v19  ;;  %v269_v24 = vmul.f32 %v417_v5, %v253_v14  ;;  %v246_v25 = vadd.f32 2.0, %v421_v20  ;;  %v130_v47 = vpop.f32.mrf.mxu1 }
  0x9e   :  { %430 = vpow2.f32 %v213_v7  ;;  %v598_v26 = vadd.f32 %v542_v11, %v167_v15  ;;  %v281_v27 = vadd.f32 2.0, %v265_v21  ;;  %v258_v28 = vmul.f32 %v419_v13, %v242_v22 }
  0x9f   :  { %432 = vpow2.f32 %v221_v8  ;;  %v601_v29 = vadd.f32 %v542_v11, %v171_v18  ;;  %v423_v34 = vpop.eup %422  ;;  %v285_v35 = vadd.f32 2.0, %v269_v24  ;;  %v262_v36 = vmul.f32 %v421_v20, %v246_v25 }
  0xa0   :  { %v203_v37 = vmin.f32 %v598_v26, 20.0  ;;  %v605_v38 = vadd.f32 %v542_v11, %v160_v23  ;;  %v425_v39 = vpop.eup %424  ;;  %v305_v40 = vmul.f32 %v423_v34, %v257_v54  ;;  %434 = vrcp.f32 %v281_v27 }
  0xa1   :  { %v274_v41 = vadd.f32 2.0, %v258_v28  ;;  %v207_v42 = vmin.f32 %v601_v29, 20.0  ;;  %v309_v44 = vmul.f32 %v425_v39, %v261_v57  ;;  %436 = vrcp.f32 %v285_v35 }
  0xa2   :  { %v427_v43 = vpop.eup %426  ;;  %v278_v45 = vadd.f32 2.0, %v262_v36  ;;  %v229_v46 = vmul.f32 1.442695, %v203_v37  ;;  %v321_v49 = vmul.f32 %v305_v40, %v547_v16  ;;  %v196_v60 = vmin.f32 %v605_v38, 20.0  ;;  %v140_v61 = vpop.f32.mrf.mxu2 }
  0xa3   :  { %v429_v48 = vpop.eup %428  ;;  %438 = vrcp.f32 %v274_v41  ;;  %v250_v50 = vadd.f32 2.0, %v427_v43  ;;  %v237_v51 = vmul.f32 1.442695, %v207_v42  ;;  %v325_v53 = vmul.f32 %v309_v44, %v550_v17  ;;  %v150_v25 = vpop.f32.mrf.mxu3 }
  0xa4   :  { %v431_v52 = vpop.eup %430  ;;  %440 = vrcp.f32 %v278_v45  ;;  %v254_v54 = vadd.f32 2.0, %v429_v48  ;;  %337 = vst.msk [vmem:[%s708_s4] sm:$0xff] %vm75_vm1, %v321_v49  ;;  %v164_v16 = vmul.f32 %v537_v10, %v130_v47  ;;  %v215_v1 = vmul.f32 1.442695, %v196_v60 }
  0xa5   :  { %v433_v62 = vpop.eup %432  ;;  %v266_v57 = vmul.f32 %v427_v43, %v250_v50  ;;  %v243_v63 = vadd.f32 2.0, %v431_v52  ;;  %442 = vpow2.f32 %v229_v46  ;;  %341 = vst.msk [vmem:[%s708_s4 + $0x20] sm:$0xff] %vm75_vm1, %v325_v53  ;;  %v168_v6 = vmul.f32 %v537_v10, %v140_v61 }
  0xa6   :  { %v270_v17 = vmul.f32 %v429_v48, %v254_v54  ;;  %v247_v0 = vadd.f32 2.0, %v433_v62  ;;  %444 = vpow2.f32 %v237_v51  ;;  %v435_v2 = vpop.eup %434  ;;  %v621_v5 = vadd.f32 %v542_v11, %v164_v16 }
  0xa7   :  { %v282_v3 = vadd.f32 2.0, %v266_v57  ;;  %v259_v4 = vmul.f32 %v431_v52, %v243_v63  ;;  %v437_v7 = vpop.eup %436  ;;  %v313_v8 = vmul.f32 %v435_v2, %v265_v21  ;;  %446 = vpow2.f32 %v215_v1 }
  0xa8   :  { %v286_v9 = vadd.f32 2.0, %v270_v17  ;;  %v263_v12 = vmul.f32 %v433_v62, %v247_v0  ;;  %v317_v14 = vmul.f32 %v437_v7, %v269_v24  ;;  %v200_v18 = vmin.f32 %v621_v5, 20.0 }
  0xa9   :  { %v439_v13 = vpop.eup %438  ;;  %448 = vrcp.f32 %v282_v3  ;;  %v275_v15 = vadd.f32 2.0, %v259_v4  ;;  %v329_v20 = vmul.f32 %v313_v8, %v559_v30  ;;  %v172_v39 = vmul.f32 %v537_v10, %v150_v25 }
  0xaa   :  { %v441_v19 = vpop.eup %440  ;;  %v306_v22 = vmul.f32 %v439_v13, %v258_v28  ;;  %450 = vrcp.f32 %v286_v9  ;;  %v279_v23 = vadd.f32 2.0, %v263_v12  ;;  %v333_v34 = vmul.f32 %v317_v14, %v562_v31 }
  0xab   :  { %v443_v27 = vpop.eup %442  ;;  %v310_v21 = vmul.f32 %v441_v19, %v262_v36  ;;  %452 = vrcp.f32 %v275_v15  ;;  %v223_v35 = vmul.f32 1.442695, %v200_v18  ;;  %345 = vst.msk [vmem:[%s708_s4 + $0x40] sm:$0xff] %vm75_vm1, %v329_v20  ;;  %v633_v28 = vadd.f32 %v542_v11, %v168_v6 }
  0xac   :  { %v445_v37 = vpop.eup %444  ;;  %v322_v24 = vmul.f32 %v306_v22, %v565_v32  ;;  %454 = vrcp.f32 %v279_v23  ;;  %v251_v30 = vadd.f32 2.0, %v443_v27  ;;  %349 = vst.msk [vmem:[%s708_s4 + $0x60] sm:$0xff] %vm75_vm1, %v333_v34  ;;  %v651_v44 = vadd.f32 %v542_v11, %v172_v39 }
  0xad   :  { %v326_v31 = vmul.f32 %v310_v21, %v568_v33  ;;  %v255_v36 = vadd.f32 2.0, %v445_v37  ;;  %456 = vpow2.f32 %v223_v35  ;;  %v447_v40 = vpop.eup %446  ;;  %v204_v41 = vmin.f32 %v633_v28, 20.0 }
  0xae   :  { %338 = vst.msk [vmem:[%s708_s4 + $0x8] sm:$0xff] %vm75_vm1, %v322_v24  ;;  %v267_v32 = vmul.f32 %v443_v27, %v251_v30  ;;  %v244_v43 = vadd.f32 2.0, %v447_v40  ;;  %v208_v52 = vmin.f32 %v651_v44, 20.0 }
  0xaf   :  { %v449_v42 = vpop.eup %448  ;;  %342 = vst.msk [vmem:[%s708_s4 + $0x28] sm:$0xff] %vm75_vm1, %v326_v31  ;;  %v271_v33 = vmul.f32 %v445_v37, %v255_v36  ;;  %v231_v47 = vmul.f32 1.442695, %v204_v41 }
  0xb0   :  { %v451_v10 = vpop.eup %450  ;;  %v314_v45 = vmul.f32 %v449_v42, %v266_v57  ;;  %v283_v46 = vadd.f32 2.0, %v267_v32  ;;  %v260_v51 = vmul.f32 %v447_v40, %v244_v43 }
  0xb1   :  { %v453_v48 = vpop.eup %452  ;;  %v318_v49 = vmul.f32 %v451_v10, %v270_v17  ;;  %v287_v50 = vadd.f32 2.0, %v271_v33  ;;  %v239_v17 = vmul.f32 1.442695, %v208_v52 }
  0xb2   :  { %v455_v53 = vpop.eup %454  ;;  %v330_v54 = vmul.f32 %v314_v45, %v579_v55  ;;  %v307_v60 = vmul.f32 %v453_v48, %v259_v4  ;;  %458 = vrcp.f32 %v283_v46  ;;  %v276_v63 = vadd.f32 2.0, %v260_v51 }
  0xb3   :  { %v457_v61 = vpop.eup %456  ;;  %v334_v62 = vmul.f32 %v318_v49, %v582_v56  ;;  %v311_v11 = vmul.f32 %v455_v53, %v263_v12  ;;  %460 = vrcp.f32 %v287_v50 }
  0xb4   :  { %346 = vst.msk [vmem:[%s708_s4 + $0x48] sm:$0xff] %vm75_vm1, %v330_v54  ;;  %v323_v57 = vmul.f32 %v307_v60, %v585_v58  ;;  %v248_v16 = vadd.f32 2.0, %v457_v61  ;;  %462 = vpow2.f32 %v231_v47 }
  0xb5   :  { %350 = vst.msk [vmem:[%s708_s4 + $0x68] sm:$0xff] %vm75_vm1, %v334_v62  ;;  %v327_v55 = vmul.f32 %v311_v11, %v588_v59  ;;  %464 = vrcp.f32 %v276_v63 }
  0xb6   :  { %339 = vst.msk [vmem:[%s708_s4 + $0x10] sm:$0xff] %vm75_vm1, %v323_v57  ;;  %v264_v56 = vmul.f32 %v457_v61, %v248_v16  ;;  %466 = vpow2.f32 %v239_v17 }
  0xb7   :  { %343 = vst.msk [vmem:[%s708_s4 + $0x30] sm:$0xff] %vm75_vm1, %v327_v55 }
  0xb8   :  { %v459_v58 = vpop.eup %458  ;;  %v280_v0 = vadd.f32 2.0, %v264_v56 }
  0xb9   :  { %v461_v1 = vpop.eup %460  ;;  %v315_v2 = vmul.f32 %v459_v58, %v267_v32 }
  0xba   :  { %v463_v3 = vpop.eup %462  ;;  %v319_v4 = vmul.f32 %v461_v1, %v271_v33  ;;  %468 = vrcp.f32 %v280_v0 }
  0xbb   :  { %v465_v59 = vpop.eup %464  ;;  %v331_v6 = vmul.f32 %v315_v2, %v598_v26  ;;  %v252_v7 = vadd.f32 2.0, %v463_v3 }
  0xbc   :  { %v467_v8 = vpop.eup %466  ;;  %v335_v9 = vmul.f32 %v319_v4, %v601_v29  ;;  %v308_v12 = vmul.f32 %v465_v59, %v260_v51 }
  0xbd   :  { %347 = vst.msk [vmem:[%s708_s4 + $0x50] sm:$0xff] %vm75_vm1, %v331_v6  ;;  %v268_v13 = vmul.f32 %v463_v3, %v252_v7  ;;  %v256_v14 = vadd.f32 2.0, %v467_v8 }
  0xbe   :  { %351 = vst.msk [vmem:[%s708_s4 + $0x70] sm:$0xff] %vm75_vm1, %v335_v9  ;;  %v324_v15 = vmul.f32 %v308_v12, %v605_v38 }
  0xbf   :  { %v284_v26 = vadd.f32 2.0, %v268_v13  ;;  %v272_v18 = vmul.f32 %v467_v8, %v256_v14 }
  0xc0   :  { %v469_v19 = vpop.eup %468  ;;  %340 = vst.msk [vmem:[%s708_s4 + $0x18] sm:$0xff] %vm75_vm1, %v324_v15 }
  0xc1   :  { %v312_v29 = vmul.f32 %v469_v19, %v264_v56  ;;  %470 = vrcp.f32 %v284_v26  ;;  %v288_v20 = vadd.f32 2.0, %v272_v18 }
  0xc3   :  { %v328_v22 = vmul.f32 %v312_v29, %v621_v5  ;;  %472 = vrcp.f32 %v288_v20 }
  0xc5   :  { %344 = vst.msk [vmem:[%s708_s4 + $0x38] sm:$0xff] %vm75_vm1, %v328_v22 }
  0xc7   :  { %v471_v38 = vpop.eup %470 }
  0xc8   :  { %v316_v23 = vmul.f32 %v471_v38, %v268_v13 }
  0xc9   :  { %v473_v25 = vpop.eup %472 }
  0xca   :  { %v332_v27 = vmul.f32 %v316_v23, %v633_v28  ;;  %v320_v34 = vmul.f32 %v473_v25, %v272_v18 }
  0xcc   :  { %348 = vst.msk [vmem:[%s708_s4 + $0x58] sm:$0xff] %vm75_vm1, %v332_v27  ;;  %v336_v21 = vmul.f32 %v320_v34, %v651_v44 }
  0xce   :  { %352 = vst.msk [vmem:[%s708_s4 + $0x78] sm:$0xff] %vm75_vm1, %v336_v21 }

// kernel: _lambda_.7
= control target key start
LH: loop header
LB: loop body
LE: loop exit
PB: predicated region body
PF: predicated region fallthrough
CT: control target
= control target key end

     0   :  { %vm119_vm0 = vcmask 1041408   ;;  %vm94_vm1 = vcmask 293888   ;;  %vm356_vm2 = vcmask 64512   ;;  %s746_s1 = inlined_call_operand.vmem [shape: bf16[36,8], index: 1, kind: input, shape index: {}]   ;;  %s747_s2 = inlined_call_operand.vmem [shape: f32[1,8], index: 2, kind: input, shape index: {}]   ;;  %s748_s3 = inlined_call_operand.vmem [shape: f32[1,8], index: 3, kind: input, shape index: {}]   ;;  %s749_s0 = inlined_call_operand.vmem [shape: bf16[128,36], index: 0, kind: input, shape index: {}]   ;;  %s750_s4 = inlined_call_operand.vmem [shape: f32[128,8], index: 4, kind: output, shape index: {}]  }
   0x1   :  { %v38_v0 = vld [vmem:[%s746_s1 + $0x10] sm:$0x3]  ;;  %v434_v4 = vld [vmem:[%s746_s1 + $0x8] sm:$0xff]  ;;  %v433_v5 = vld [vmem:[%s746_s1] sm:$0xff] }
   0x2   :  { %v88_v1 = vunpack.c.l.b16 %v38_v0  ;;  %v425_v6 = vld [vmem:[%s749_s0] sm:$0xff]  ;;  %v427_v7 = vld [vmem:[%s749_s0 + $0x10] sm:$0xff]  ;;  %v426_v10 = vld [vmem:[%s749_s0 + $0x8] sm:$0xff] }
   0x3   :  { %v429_v8 = vld [vmem:[%s749_s0 + $0x20] sm:$0xff]  ;;  %v431_v9 = vld [vmem:[%s749_s0 + $0x30] sm:$0xff]  ;;  %v428_v11 = vld [vmem:[%s749_s0 + $0x18] sm:$0xff] }
   0x4   :  { %v91_v2 = vpack.c.b16 %v88_v1, %v88_v1  ;;  %v430_v12 = vld [vmem:[%s749_s0 + $0x28] sm:$0xff]  ;;  %v432_v13 = vld [vmem:[%s749_s0 + $0x38] sm:$0xff]  ;;  %v579_v14 = vld [vmem:[%s747_s2] ss:$0 sm:$0xff] }
   0x5   :  { %v584_v15 = vld [vmem:[%s748_s3] ss:$0 sm:$0xff] }
   0x6   :  { %v121_v3 = vsel %vm119_vm0, %v91_v2, 0 }
   0x7   :  { %128 = vmatpush.bf16.msra.mxu0 %v121_v3  ;;  %435 = vmatpush.bf16.msra.mxu1 %v121_v3 }
   0x8   :  { %436 = vmatpush.bf16.msra.mxu2 %v121_v3  ;;  %437 = vmatpush.bf16.msra.mxu3 %v121_v3 }
   0xb   :  { %129 = vmatpush.bf16.msra.mxu0 %v434_v4  ;;  %438 = vmatpush.bf16.msra.mxu1 %v434_v4 }
   0xc   :  { %439 = vmatpush.bf16.msra.mxu2 %v434_v4  ;;  %440 = vmatpush.bf16.msra.mxu3 %v434_v4 }
   0xf   :  { %130 = vmatpush.bf16.msra.mxu0 %v433_v5  ;;  %441 = vmatpush.bf16.msra.mxu1 %v433_v5 }
  0x10   :  { %442 = vmatpush.bf16.msra.mxu2 %v433_v5  ;;  %443 = vmatpush.bf16.msra.mxu3 %v433_v5 }
  0x12   :  { %417 = vmatmul.msk.bf16.vlgmr.msra.gmra.mxu0 %vm94_vm1, %v425_v6  ;;  %419 = vmatmul.msk.bf16.vlgmr.msra.gmra.mxu1 %vm94_vm1, %v427_v7 }
  0x13   :  { %421 = vmatmul.msk.bf16.vlgmr.msra.gmra.mxu2 %vm94_vm1, %v429_v8  ;;  %423 = vmatmul.msk.bf16.vlgmr.msra.gmra.mxu3 %vm94_vm1, %v431_v9 }
  0x22   :  { %418 = vmatmul.msk.bf16.gmra.mxu0 %vm94_vm1, %v426_v10  ;;  %420 = vmatmul.msk.bf16.gmra.mxu1 %vm94_vm1, %v428_v11 }
  0x23   :  { %422 = vmatmul.msk.bf16.gmra.mxu2 %vm94_vm1, %v430_v12  ;;  %424 = vmatmul.msk.bf16.gmra.mxu3 %vm94_vm1, %v432_v13 }
  0x8f   :  { %v132_v16 = vpop.f32.mrf.mxu0  ;;  %v142_v17 = vpop.f32.mrf.mxu1 }
  0x90   :  { %v176_v18 = vmul.f32 %v579_v14, %v132_v16  ;;  %v180_v19 = vmul.f32 %v579_v14, %v142_v17 }
  0x92   :  { %v589_v20 = vadd.f32 %v584_v15, %v176_v18  ;;  %v592_v21 = vadd.f32 %v584_v15, %v180_v19 }
  0x94   :  { %v212_v22 = vmin.f32 %v589_v20, 20.0  ;;  %v216_v23 = vmin.f32 %v592_v21, 20.0 }
  0x96   :  { %v228_v24 = vmul.f32 1.442695, %v212_v22  ;;  %v236_v25 = vmul.f32 1.442695, %v216_v23  ;;  %v152_v26 = vpop.f32.mrf.mxu2  ;;  %v162_v27 = vpop.f32.mrf.mxu3 }
  0x97   :  { %v184_v28 = vmul.f32 %v579_v14, %v152_v26  ;;  %v188_v29 = vmul.f32 %v579_v14, %v162_v27  ;;  %v134_v30 = vpop.f32.mrf.mxu0  ;;  %v144_v31 = vpop.f32.mrf.mxu1 }
  0x98   :  { %446 = vpow2.f32 %v228_v24  ;;  %v177_v32 = vmul.f32 %v579_v14, %v134_v30  ;;  %v181_v33 = vmul.f32 %v579_v14, %v144_v31 }
  0x99   :  { %448 = vpow2.f32 %v236_v25  ;;  %v601_v34 = vadd.f32 %v584_v15, %v184_v28  ;;  %v604_v35 = vadd.f32 %v584_v15, %v188_v29 }
  0x9a   :  { %v607_v36 = vadd.f32 %v584_v15, %v177_v32  ;;  %v610_v37 = vadd.f32 %v584_v15, %v181_v33 }
  0x9b   :  { %v220_v38 = vmin.f32 %v601_v34, 20.0  ;;  %v224_v39 = vmin.f32 %v604_v35, 20.0 }
  0x9c   :  { %v213_v40 = vmin.f32 %v607_v36, 20.0  ;;  %v217_v41 = vmin.f32 %v610_v37, 20.0 }
  0x9d   :  { %v244_v42 = vmul.f32 1.442695, %v220_v38  ;;  %v252_v43 = vmul.f32 1.442695, %v224_v39 }
  0x9e   :  { %v447_v44 = vpop.eup %446  ;;  %v230_v45 = vmul.f32 1.442695, %v213_v40  ;;  %v238_v46 = vmul.f32 1.442695, %v217_v41  ;;  %v154_v47 = vpop.f32.mrf.mxu2 }
  0x9f   :  { %v164_v48 = vpop.f32.mrf.mxu3  ;;  %v449_v49 = vpop.eup %448  ;;  %v260_v50 = vadd.f32 2.0, %v447_v44  ;;  %450 = vpow2.f32 %v244_v42  ;;  %v185_v51 = vmul.f32 %v579_v14, %v154_v47 }
  0xa0   :  { %v189_v52 = vmul.f32 %v579_v14, %v164_v48  ;;  %v137_v53 = vpop.f32.mrf.mxu0  ;;  %v147_v54 = vpop.f32.mrf.mxu1  ;;  %v264_v55 = vadd.f32 2.0, %v449_v49  ;;  %452 = vpow2.f32 %v252_v43 }
  0xa1   :  { %v178_v56 = vmul.f32 %v579_v14, %v137_v53  ;;  %v182_v57 = vmul.f32 %v579_v14, %v147_v54  ;;  %v276_v58 = vmul.f32 %v447_v44, %v260_v50  ;;  %454 = vpow2.f32 %v230_v45 }
  0xa2   :  { %v621_v59 = vadd.f32 %v584_v15, %v185_v51  ;;  %v624_v60 = vadd.f32 %v584_v15, %v189_v52  ;;  %v280_v61 = vmul.f32 %v449_v49, %v264_v55  ;;  %456 = vpow2.f32 %v238_v46 }
  0xa3   :  { %v627_v62 = vadd.f32 %v584_v15, %v178_v56  ;;  %v630_v63 = vadd.f32 %v584_v15, %v182_v57  ;;  %v292_v0 = vadd.f32 2.0, %v276_v58 }
  0xa4   :  { %v221_v1 = vmin.f32 %v621_v59, 20.0  ;;  %v225_v2 = vmin.f32 %v624_v60, 20.0  ;;  %v296_v3 = vadd.f32 2.0, %v280_v61 }
  0xa5   :  { %v214_v4 = vmin.f32 %v627_v62, 20.0  ;;  %v218_v5 = vmin.f32 %v630_v63, 20.0  ;;  %v451_v6 = vpop.eup %450  ;;  %458 = vrcp.f32 %v292_v0 }
  0xa6   :  { %v246_v7 = vmul.f32 1.442695, %v221_v1  ;;  %v254_v8 = vmul.f32 1.442695, %v225_v2  ;;  %v453_v9 = vpop.eup %452  ;;  %460 = vrcp.f32 %v296_v3  ;;  %v268_v10 = vadd.f32 2.0, %v451_v6  ;;  %v157_v13 = vpop.f32.mrf.mxu2 }
  0xa7   :  { %v232_v11 = vmul.f32 1.442695, %v214_v4  ;;  %v240_v12 = vmul.f32 1.442695, %v218_v5  ;;  %v167_v16 = vpop.f32.mrf.mxu3  ;;  %v455_v17 = vpop.eup %454  ;;  %v272_v18 = vadd.f32 2.0, %v453_v9  ;;  %v186_v19 = vmul.f32 %v579_v14, %v157_v13 }
  0xa8   :  { %462 = vpow2.f32 %v246_v7  ;;  %v190_v22 = vmul.f32 %v579_v14, %v167_v16  ;;  %v139_v23 = vpop.f32.mrf.mxu0  ;;  %v457_v24 = vpop.eup %456  ;;  %v284_v25 = vmul.f32 %v451_v6, %v268_v10  ;;  %v261_v26 = vadd.f32 2.0, %v455_v17 }
  0xa9   :  { %464 = vpow2.f32 %v254_v8  ;;  %v179_v27 = vmul.f32 %v579_v14, %v139_v23  ;;  %v288_v28 = vmul.f32 %v453_v9, %v272_v18  ;;  %v265_v29 = vadd.f32 2.0, %v457_v24  ;;  %v149_v51 = vpop.f32.mrf.mxu1 }
  0xaa   :  { %466 = vpow2.f32 %v232_v11  ;;  %v640_v30 = vadd.f32 %v584_v15, %v186_v19  ;;  %v300_v31 = vadd.f32 2.0, %v284_v25  ;;  %v277_v32 = vmul.f32 %v455_v17, %v261_v26 }
  0xab   :  { %468 = vpow2.f32 %v240_v12  ;;  %v643_v33 = vadd.f32 %v584_v15, %v190_v22  ;;  %v459_v38 = vpop.eup %458  ;;  %v304_v39 = vadd.f32 2.0, %v288_v28  ;;  %v281_v40 = vmul.f32 %v457_v24, %v265_v29 }
  0xac   :  { %v222_v41 = vmin.f32 %v640_v30, 20.0  ;;  %v647_v42 = vadd.f32 %v584_v15, %v179_v27  ;;  %v461_v43 = vpop.eup %460  ;;  %v324_v44 = vmul.f32 %v459_v38, %v276_v58  ;;  %470 = vrcp.f32 %v300_v31 }
  0xad   :  { %v293_v45 = vadd.f32 2.0, %v277_v32  ;;  %v226_v46 = vmin.f32 %v643_v33, 20.0  ;;  %v328_v48 = vmul.f32 %v461_v43, %v280_v61  ;;  %472 = vrcp.f32 %v304_v39 }
  0xae   :  { %v463_v47 = vpop.eup %462  ;;  %v297_v49 = vadd.f32 2.0, %v281_v40  ;;  %v248_v50 = vmul.f32 1.442695, %v222_v41  ;;  %v340_v53 = vmul.f32 %v324_v44, %v589_v20  ;;  %v215_v0 = vmin.f32 %v647_v42, 20.0  ;;  %v159_v1 = vpop.f32.mrf.mxu2 }
  0xaf   :  { %v465_v52 = vpop.eup %464  ;;  %474 = vrcp.f32 %v293_v45  ;;  %v269_v54 = vadd.f32 2.0, %v463_v47  ;;  %v256_v55 = vmul.f32 1.442695, %v226_v46  ;;  %v344_v57 = vmul.f32 %v328_v48, %v592_v21  ;;  %v169_v29 = vpop.f32.mrf.mxu3 }
  0xb0   :  { %v467_v56 = vpop.eup %466  ;;  %476 = vrcp.f32 %v297_v49  ;;  %v273_v58 = vadd.f32 2.0, %v465_v52  ;;  %357 = vst.msk [vmem:[%s750_s4] sm:$0xff] %vm356_vm2, %v340_v53  ;;  %v183_v20 = vmul.f32 %v579_v14, %v149_v51  ;;  %v234_v5 = vmul.f32 1.442695, %v215_v0 }
  0xb1   :  { %v469_v2 = vpop.eup %468  ;;  %v285_v61 = vmul.f32 %v463_v47, %v269_v54  ;;  %v262_v3 = vadd.f32 2.0, %v467_v56  ;;  %478 = vpow2.f32 %v248_v50  ;;  %361 = vst.msk [vmem:[%s750_s4 + $0x20] sm:$0xff] %vm356_vm2, %v344_v57  ;;  %v187_v10 = vmul.f32 %v579_v14, %v159_v1 }
  0xb2   :  { %v289_v21 = vmul.f32 %v465_v52, %v273_v58  ;;  %v266_v4 = vadd.f32 2.0, %v469_v2  ;;  %480 = vpow2.f32 %v256_v55  ;;  %v471_v6 = vpop.eup %470  ;;  %v663_v9 = vadd.f32 %v584_v15, %v183_v20 }
  0xb3   :  { %v301_v7 = vadd.f32 2.0, %v285_v61  ;;  %v278_v8 = vmul.f32 %v467_v56, %v262_v3  ;;  %v473_v11 = vpop.eup %472  ;;  %v332_v12 = vmul.f32 %v471_v6, %v284_v25  ;;  %482 = vpow2.f32 %v234_v5 }
  0xb4   :  { %v305_v13 = vadd.f32 2.0, %v289_v21  ;;  %v282_v16 = vmul.f32 %v469_v2, %v266_v4  ;;  %v336_v18 = vmul.f32 %v473_v11, %v288_v28  ;;  %v219_v22 = vmin.f32 %v663_v9, 20.0 }
  0xb5   :  { %v475_v17 = vpop.eup %474  ;;  %484 = vrcp.f32 %v301_v7  ;;  %v294_v19 = vadd.f32 2.0, %v278_v8  ;;  %v348_v24 = vmul.f32 %v332_v12, %v601_v34  ;;  %v191_v43 = vmul.f32 %v579_v14, %v169_v29 }
  0xb6   :  { %v477_v23 = vpop.eup %476  ;;  %v325_v26 = vmul.f32 %v475_v17, %v277_v32  ;;  %486 = vrcp.f32 %v305_v13  ;;  %v298_v27 = vadd.f32 2.0, %v282_v16  ;;  %v352_v38 = vmul.f32 %v336_v18, %v604_v35 }
  0xb7   :  { %v479_v31 = vpop.eup %478  ;;  %v329_v25 = vmul.f32 %v477_v23, %v281_v40  ;;  %488 = vrcp.f32 %v294_v19  ;;  %v242_v39 = vmul.f32 1.442695, %v219_v22  ;;  %365 = vst.msk [vmem:[%s750_s4 + $0x40] sm:$0xff] %vm356_vm2, %v348_v24  ;;  %v675_v32 = vadd.f32 %v584_v15, %v187_v10 }
  0xb8   :  { %v481_v41 = vpop.eup %480  ;;  %v341_v28 = vmul.f32 %v325_v26, %v607_v36  ;;  %490 = vrcp.f32 %v298_v27  ;;  %v270_v34 = vadd.f32 2.0, %v479_v31  ;;  %369 = vst.msk [vmem:[%s750_s4 + $0x60] sm:$0xff] %vm356_vm2, %v352_v38  ;;  %v693_v48 = vadd.f32 %v584_v15, %v191_v43 }
  0xb9   :  { %v345_v35 = vmul.f32 %v329_v25, %v610_v37  ;;  %v274_v40 = vadd.f32 2.0, %v481_v41  ;;  %492 = vpow2.f32 %v242_v39  ;;  %v483_v44 = vpop.eup %482  ;;  %v223_v45 = vmin.f32 %v675_v32, 20.0 }
  0xba   :  { %358 = vst.msk [vmem:[%s750_s4 + $0x8] sm:$0xff] %vm356_vm2, %v341_v28  ;;  %v286_v36 = vmul.f32 %v479_v31, %v270_v34  ;;  %v263_v47 = vadd.f32 2.0, %v483_v44  ;;  %v227_v56 = vmin.f32 %v693_v48, 20.0 }
  0xbb   :  { %v485_v46 = vpop.eup %484  ;;  %362 = vst.msk [vmem:[%s750_s4 + $0x28] sm:$0xff] %vm356_vm2, %v345_v35  ;;  %v290_v37 = vmul.f32 %v481_v41, %v274_v40  ;;  %v250_v51 = vmul.f32 1.442695, %v223_v45 }
  0xbc   :  { %v487_v14 = vpop.eup %486  ;;  %v333_v49 = vmul.f32 %v485_v46, %v285_v61  ;;  %v302_v50 = vadd.f32 2.0, %v286_v36  ;;  %v279_v55 = vmul.f32 %v483_v44, %v263_v47 }
  0xbd   :  { %v489_v52 = vpop.eup %488  ;;  %v337_v53 = vmul.f32 %v487_v14, %v289_v21  ;;  %v306_v54 = vadd.f32 2.0, %v290_v37  ;;  %v258_v21 = vmul.f32 1.442695, %v227_v56 }
  0xbe   :  { %v491_v57 = vpop.eup %490  ;;  %v349_v58 = vmul.f32 %v333_v49, %v621_v59  ;;  %v326_v0 = vmul.f32 %v489_v52, %v278_v8  ;;  %494 = vrcp.f32 %v302_v50  ;;  %v295_v3 = vadd.f32 2.0, %v279_v55 }
  0xbf   :  { %v493_v1 = vpop.eup %492  ;;  %v353_v2 = vmul.f32 %v337_v53, %v624_v60  ;;  %v330_v15 = vmul.f32 %v491_v57, %v282_v16  ;;  %496 = vrcp.f32 %v306_v54 }
  0xc0   :  { %366 = vst.msk [vmem:[%s750_s4 + $0x48] sm:$0xff] %vm356_vm2, %v349_v58  ;;  %v342_v61 = vmul.f32 %v326_v0, %v627_v62  ;;  %v267_v20 = vadd.f32 2.0, %v493_v1  ;;  %498 = vpow2.f32 %v250_v51 }
  0xc1   :  { %370 = vst.msk [vmem:[%s750_s4 + $0x68] sm:$0xff] %vm356_vm2, %v353_v2  ;;  %v346_v59 = vmul.f32 %v330_v15, %v630_v63  ;;  %500 = vrcp.f32 %v295_v3 }
  0xc2   :  { %359 = vst.msk [vmem:[%s750_s4 + $0x10] sm:$0xff] %vm356_vm2, %v342_v61  ;;  %v283_v60 = vmul.f32 %v493_v1, %v267_v20  ;;  %502 = vpow2.f32 %v258_v21 }
  0xc3   :  { %363 = vst.msk [vmem:[%s750_s4 + $0x30] sm:$0xff] %vm356_vm2, %v346_v59 }
  0xc4   :  { %v495_v62 = vpop.eup %494  ;;  %v299_v4 = vadd.f32 2.0, %v283_v60 }
  0xc5   :  { %v497_v5 = vpop.eup %496  ;;  %v334_v6 = vmul.f32 %v495_v62, %v286_v36 }
  0xc6   :  { %v499_v7 = vpop.eup %498  ;;  %v338_v8 = vmul.f32 %v497_v5, %v290_v37  ;;  %504 = vrcp.f32 %v299_v4 }
  0xc7   :  { %v501_v63 = vpop.eup %500  ;;  %v350_v10 = vmul.f32 %v334_v6, %v640_v30  ;;  %v271_v11 = vadd.f32 2.0, %v499_v7 }
  0xc8   :  { %v503_v12 = vpop.eup %502  ;;  %v354_v13 = vmul.f32 %v338_v8, %v643_v33  ;;  %v327_v16 = vmul.f32 %v501_v63, %v279_v55 }
  0xc9   :  { %367 = vst.msk [vmem:[%s750_s4 + $0x50] sm:$0xff] %vm356_vm2, %v350_v10  ;;  %v287_v17 = vmul.f32 %v499_v7, %v271_v11  ;;  %v275_v18 = vadd.f32 2.0, %v503_v12 }
  0xca   :  { %371 = vst.msk [vmem:[%s750_s4 + $0x70] sm:$0xff] %vm356_vm2, %v354_v13  ;;  %v343_v19 = vmul.f32 %v327_v16, %v647_v42 }
  0xcb   :  { %v303_v30 = vadd.f32 2.0, %v287_v17  ;;  %v291_v22 = vmul.f32 %v503_v12, %v275_v18 }
  0xcc   :  { %v505_v23 = vpop.eup %504  ;;  %360 = vst.msk [vmem:[%s750_s4 + $0x18] sm:$0xff] %vm356_vm2, %v343_v19 }
  0xcd   :  { %v331_v33 = vmul.f32 %v505_v23, %v283_v60  ;;  %506 = vrcp.f32 %v303_v30  ;;  %v307_v24 = vadd.f32 2.0, %v291_v22 }
  0xcf   :  { %v347_v26 = vmul.f32 %v331_v33, %v663_v9  ;;  %508 = vrcp.f32 %v307_v24 }
  0xd1   :  { %364 = vst.msk [vmem:[%s750_s4 + $0x38] sm:$0xff] %vm356_vm2, %v347_v26 }
  0xd3   :  { %v507_v42 = vpop.eup %506 }
  0xd4   :  { %v335_v27 = vmul.f32 %v507_v42, %v287_v17 }
  0xd5   :  { %v509_v29 = vpop.eup %508 }
  0xd6   :  { %v351_v31 = vmul.f32 %v335_v27, %v675_v32  ;;  %v339_v38 = vmul.f32 %v509_v29, %v291_v22 }
  0xd8   :  { %368 = vst.msk [vmem:[%s750_s4 + $0x58] sm:$0xff] %vm356_vm2, %v351_v31  ;;  %v355_v25 = vmul.f32 %v339_v38, %v693_v48 }
  0xda   :  { %372 = vst.msk [vmem:[%s750_s4 + $0x78] sm:$0xff] %vm356_vm2, %v355_v25 }

// kernel: _lambda_.9
= control target key start
LH: loop header
LB: loop body
LE: loop exit
PB: predicated region body
PF: predicated region fallthrough
CT: control target
= control target key end

     0   :  { %vm100_vm0 = vcmask 1041408   ;;  %vm75_vm1 = vcmask 31744   ;;  %s704_s1 = inlined_call_operand.vmem [shape: bf16[4,4], index: 1, kind: input, shape index: {}]   ;;  %s705_s0 = inlined_call_operand.vmem [shape: bf16[128,4], index: 0, kind: input, shape index: {}]   ;;  %s706_s2 = inlined_call_operand.vmem [shape: f32[1,4], index: 2, kind: input, shape index: {}]   ;;  %s707_s3 = inlined_call_operand.vmem [shape: f32[1,4], index: 3, kind: input, shape index: {}]   ;;  %s708_s4 = inlined_call_operand.vmem [shape: f32[128,4], index: 4, kind: output, shape index: {}]  }
   0x1   :  { %v34_v0 = vld [vmem:[%s704_s1] sm:$0x3]  ;;  %v399_v3 = vld [vmem:[%s705_s0 + $0x10] sm:$0xff]  ;;  %v398_v6 = vld [vmem:[%s705_s0 + $0x8] sm:$0xff] }
   0x2   :  { %v102_v1 = vsel %vm100_vm0, %v34_v0, 0  ;;  %v397_v2 = vld [vmem:[%s705_s0] sm:$0xff]  ;;  %v403_v5 = vld [vmem:[%s705_s0 + $0x30] sm:$0xff]  ;;  %v400_v7 = vld [vmem:[%s705_s0 + $0x18] sm:$0xff] }
   0x3   :  { %111 = vmatpush.bf16.msra.mxu0 %v102_v1  ;;  %405 = vmatpush.bf16.msra.mxu1 %v102_v1  ;;  %v401_v4 = vld [vmem:[%s705_s0 + $0x20] sm:$0xff]  ;;  %v402_v8 = vld [vmem:[%s705_s0 + $0x28] sm:$0xff]  ;;  %v404_v9 = vld [vmem:[%s705_s0 + $0x38] sm:$0xff] }
   0x4   :  { %406 = vmatpush.bf16.msra.mxu2 %v102_v1  ;;  %407 = vmatpush.bf16.msra.mxu3 %v102_v1  ;;  %v537_v10 = vld [vmem:[%s706_s2] ss:$0 sm:$0xff] }
   0x5   :  { %v542_v11 = vld [vmem:[%s707_s3] ss:$0 sm:$0xff] }
   0x6   :  { %389 = vmatmul.msk.bf16.vlgmr.msra.gmra.mxu0 %vm75_vm1, %v397_v2  ;;  %391 = vmatmul.msk.bf16.vlgmr.msra.gmra.mxu1 %vm75_vm1, %v399_v3 }
   0x7   :  { %393 = vmatmul.msk.bf16.vlgmr.msra.gmra.mxu2 %vm75_vm1, %v401_v4  ;;  %395 = vmatmul.msk.bf16.vlgmr.msra.gmra.mxu3 %vm75_vm1, %v403_v5 }
  0x16   :  { %390 = vmatmul.msk.bf16.gmra.mxu0 %vm75_vm1, %v398_v6  ;;  %392 = vmatmul.msk.bf16.gmra.mxu1 %vm75_vm1, %v400_v7 }
  0x17   :  { %394 = vmatmul.msk.bf16.gmra.mxu2 %vm75_vm1, %v402_v8  ;;  %396 = vmatmul.msk.bf16.gmra.mxu3 %vm75_vm1, %v404_v9 }
  0x83   :  { %v113_v12 = vpop.f32.mrf.mxu0  ;;  %v123_v13 = vpop.f32.mrf.mxu1 }
  0x84   :  { %v157_v14 = vmul.f32 %v537_v10, %v113_v12  ;;  %v161_v15 = vmul.f32 %v537_v10, %v123_v13 }
  0x86   :  { %v547_v16 = vadd.f32 %v542_v11, %v157_v14  ;;  %v550_v17 = vadd.f32 %v542_v11, %v161_v15 }
  0x88   :  { %v193_v18 = vmin.f32 %v547_v16, 20.0  ;;  %v197_v19 = vmin.f32 %v550_v17, 20.0 }
  0x8a   :  { %v209_v20 = vmul.f32 1.442695, %v193_v18  ;;  %v217_v21 = vmul.f32 1.442695, %v197_v19  ;;  %v133_v22 = vpop.f32.mrf.mxu2  ;;  %v143_v23 = vpop.f32.mrf.mxu3 }
  0x8b   :  { %v165_v24 = vmul.f32 %v537_v10, %v133_v22  ;;  %v169_v25 = vmul.f32 %v537_v10, %v143_v23  ;;  %v115_v26 = vpop.f32.mrf.mxu0  ;;  %v125_v27 = vpop.f32.mrf.mxu1 }
  0x8c   :  { %410 = vpow2.f32 %v209_v20  ;;  %v158_v28 = vmul.f32 %v537_v10, %v115_v26  ;;  %v162_v29 = vmul.f32 %v537_v10, %v125_v27 }
  0x8d   :  { %412 = vpow2.f32 %v217_v21  ;;  %v559_v30 = vadd.f32 %v542_v11, %v165_v24  ;;  %v562_v31 = vadd.f32 %v542_v11, %v169_v25 }
  0x8e   :  { %v565_v32 = vadd.f32 %v542_v11, %v158_v28  ;;  %v568_v33 = vadd.f32 %v542_v11, %v162_v29 }
  0x8f   :  { %v201_v34 = vmin.f32 %v559_v30, 20.0  ;;  %v205_v35 = vmin.f32 %v562_v31, 20.0 }
  0x90   :  { %v194_v36 = vmin.f32 %v565_v32, 20.0  ;;  %v198_v37 = vmin.f32 %v568_v33, 20.0 }
  0x91   :  { %v225_v38 = vmul.f32 1.442695, %v201_v34  ;;  %v233_v39 = vmul.f32 1.442695, %v205_v35 }
  0x92   :  { %v411_v40 = vpop.eup %410  ;;  %v211_v41 = vmul.f32 1.442695, %v194_v36  ;;  %v219_v42 = vmul.f32 1.442695, %v198_v37  ;;  %v135_v43 = vpop.f32.mrf.mxu2 }
  0x93   :  { %v145_v44 = vpop.f32.mrf.mxu3  ;;  %v413_v45 = vpop.eup %412  ;;  %v241_v46 = vadd.f32 2.0, %v411_v40  ;;  %414 = vpow2.f32 %v225_v38  ;;  %v166_v47 = vmul.f32 %v537_v10, %v135_v43 }
  0x94   :  { %v170_v48 = vmul.f32 %v537_v10, %v145_v44  ;;  %v118_v49 = vpop.f32.mrf.mxu0  ;;  %v128_v50 = vpop.f32.mrf.mxu1  ;;  %v245_v51 = vadd.f32 2.0, %v413_v45  ;;  %416 = vpow2.f32 %v233_v39 }
  0x95   :  { %v159_v52 = vmul.f32 %v537_v10, %v118_v49  ;;  %v163_v53 = vmul.f32 %v537_v10, %v128_v50  ;;  %v257_v54 = vmul.f32 %v411_v40, %v241_v46  ;;  %418 = vpow2.f32 %v211_v41 }
  0x96   :  { %v579_v55 = vadd.f32 %v542_v11, %v166_v47  ;;  %v582_v56 = vadd.f32 %v542_v11, %v170_v48  ;;  %v261_v57 = vmul.f32 %v413_v45, %v245_v51  ;;  %420 = vpow2.f32 %v219_v42 }
  0x97   :  { %v585_v58 = vadd.f32 %v542_v11, %v159_v52  ;;  %v588_v59 = vadd.f32 %v542_v11, %v163_v53  ;;  %v273_v60 = vadd.f32 2.0, %v257_v54 }
  0x98   :  { %v202_v61 = vmin.f32 %v579_v55, 20.0  ;;  %v206_v62 = vmin.f32 %v582_v56, 20.0  ;;  %v277_v63 = vadd.f32 2.0, %v261_v57 }
  0x99   :  { %v195_v0 = vmin.f32 %v585_v58, 20.0  ;;  %v199_v1 = vmin.f32 %v588_v59, 20.0  ;;  %v415_v2 = vpop.eup %414  ;;  %422 = vrcp.f32 %v273_v60 }
  0x9a   :  { %v227_v3 = vmul.f32 1.442695, %v202_v61  ;;  %v235_v4 = vmul.f32 1.442695, %v206_v62  ;;  %v417_v5 = vpop.eup %416  ;;  %424 = vrcp.f32 %v277_v63  ;;  %v249_v6 = vadd.f32 2.0, %v415_v2  ;;  %v138_v9 = vpop.f32.mrf.mxu2 }
  0x9b   :  { %v213_v7 = vmul.f32 1.442695, %v195_v0  ;;  %v221_v8 = vmul.f32 1.442695, %v199_v1  ;;  %v148_v12 = vpop.f32.mrf.mxu3  ;;  %v419_v13 = vpop.eup %418  ;;  %v253_v14 = vadd.f32 2.0, %v417_v5  ;;  %v167_v15 = vmul.f32 %v537_v10, %v138_v9 }
  0x9c   :  { %426 = vpow2.f32 %v227_v3  ;;  %v171_v18 = vmul.f32 %v537_v10, %v148_v12  ;;  %v120_v19 = vpop.f32.mrf.mxu0  ;;  %v421_v20 = vpop.eup %420  ;;  %v265_v21 = vmul.f32 %v415_v2, %v249_v6  ;;  %v242_v22 = vadd.f32 2.0, %v419_v13 }
  0x9d   :  { %428 = vpow2.f32 %v235_v4  ;;  %v160_v23 = vmul.f32 %v537_v10, %v120_v19  ;;  %v269_v24 = vmul.f32 %v417_v5, %v253_v14  ;;  %v246_v25 = vadd.f32 2.0, %v421_v20  ;;  %v130_v47 = vpop.f32.mrf.mxu1 }
  0x9e   :  { %430 = vpow2.f32 %v213_v7  ;;  %v598_v26 = vadd.f32 %v542_v11, %v167_v15  ;;  %v281_v27 = vadd.f32 2.0, %v265_v21  ;;  %v258_v28 = vmul.f32 %v419_v13, %v242_v22 }
  0x9f   :  { %432 = vpow2.f32 %v221_v8  ;;  %v601_v29 = vadd.f32 %v542_v11, %v171_v18  ;;  %v423_v34 = vpop.eup %422  ;;  %v285_v35 = vadd.f32 2.0, %v269_v24  ;;  %v262_v36 = vmul.f32 %v421_v20, %v246_v25 }
  0xa0   :  { %v203_v37 = vmin.f32 %v598_v26, 20.0  ;;  %v605_v38 = vadd.f32 %v542_v11, %v160_v23  ;;  %v425_v39 = vpop.eup %424  ;;  %v305_v40 = vmul.f32 %v423_v34, %v257_v54  ;;  %434 = vrcp.f32 %v281_v27 }
  0xa1   :  { %v274_v41 = vadd.f32 2.0, %v258_v28  ;;  %v207_v42 = vmin.f32 %v601_v29, 20.0  ;;  %v309_v44 = vmul.f32 %v425_v39, %v261_v57  ;;  %436 = vrcp.f32 %v285_v35 }
  0xa2   :  { %v427_v43 = vpop.eup %426  ;;  %v278_v45 = vadd.f32 2.0, %v262_v36  ;;  %v229_v46 = vmul.f32 1.442695, %v203_v37  ;;  %v321_v49 = vmul.f32 %v305_v40, %v547_v16  ;;  %v196_v60 = vmin.f32 %v605_v38, 20.0  ;;  %v140_v61 = vpop.f32.mrf.mxu2 }
  0xa3   :  { %v429_v48 = vpop.eup %428  ;;  %438 = vrcp.f32 %v274_v41  ;;  %v250_v50 = vadd.f32 2.0, %v427_v43  ;;  %v237_v51 = vmul.f32 1.442695, %v207_v42  ;;  %v325_v53 = vmul.f32 %v309_v44, %v550_v17  ;;  %v150_v25 = vpop.f32.mrf.mxu3 }
  0xa4   :  { %v431_v52 = vpop.eup %430  ;;  %440 = vrcp.f32 %v278_v45  ;;  %v254_v54 = vadd.f32 2.0, %v429_v48  ;;  %337 = vst.msk [vmem:[%s708_s4] sm:$0xff] %vm75_vm1, %v321_v49  ;;  %v164_v16 = vmul.f32 %v537_v10, %v130_v47  ;;  %v215_v1 = vmul.f32 1.442695, %v196_v60 }
  0xa5   :  { %v433_v62 = vpop.eup %432  ;;  %v266_v57 = vmul.f32 %v427_v43, %v250_v50  ;;  %v243_v63 = vadd.f32 2.0, %v431_v52  ;;  %442 = vpow2.f32 %v229_v46  ;;  %341 = vst.msk [vmem:[%s708_s4 + $0x20] sm:$0xff] %vm75_vm1, %v325_v53  ;;  %v168_v6 = vmul.f32 %v537_v10, %v140_v61 }
  0xa6   :  { %v270_v17 = vmul.f32 %v429_v48, %v254_v54  ;;  %v247_v0 = vadd.f32 2.0, %v433_v62  ;;  %444 = vpow2.f32 %v237_v51  ;;  %v435_v2 = vpop.eup %434  ;;  %v621_v5 = vadd.f32 %v542_v11, %v164_v16 }
  0xa7   :  { %v282_v3 = vadd.f32 2.0, %v266_v57  ;;  %v259_v4 = vmul.f32 %v431_v52, %v243_v63  ;;  %v437_v7 = vpop.eup %436  ;;  %v313_v8 = vmul.f32 %v435_v2, %v265_v21  ;;  %446 = vpow2.f32 %v215_v1 }
  0xa8   :  { %v286_v9 = vadd.f32 2.0, %v270_v17  ;;  %v263_v12 = vmul.f32 %v433_v62, %v247_v0  ;;  %v317_v14 = vmul.f32 %v437_v7, %v269_v24  ;;  %v200_v18 = vmin.f32 %v621_v5, 20.0 }
  0xa9   :  { %v439_v13 = vpop.eup %438  ;;  %448 = vrcp.f32 %v282_v3  ;;  %v275_v15 = vadd.f32 2.0, %v259_v4  ;;  %v329_v20 = vmul.f32 %v313_v8, %v559_v30  ;;  %v172_v39 = vmul.f32 %v537_v10, %v150_v25 }
  0xaa   :  { %v441_v19 = vpop.eup %440  ;;  %v306_v22 = vmul.f32 %v439_v13, %v258_v28  ;;  %450 = vrcp.f32 %v286_v9  ;;  %v279_v23 = vadd.f32 2.0, %v263_v12  ;;  %v333_v34 = vmul.f32 %v317_v14, %v562_v31 }
  0xab   :  { %v443_v27 = vpop.eup %442  ;;  %v310_v21 = vmul.f32 %v441_v19, %v262_v36  ;;  %452 = vrcp.f32 %v275_v15  ;;  %v223_v35 = vmul.f32 1.442695, %v200_v18  ;;  %345 = vst.msk [vmem:[%s708_s4 + $0x40] sm:$0xff] %vm75_vm1, %v329_v20  ;;  %v633_v28 = vadd.f32 %v542_v11, %v168_v6 }
  0xac   :  { %v445_v37 = vpop.eup %444  ;;  %v322_v24 = vmul.f32 %v306_v22, %v565_v32  ;;  %454 = vrcp.f32 %v279_v23  ;;  %v251_v30 = vadd.f32 2.0, %v443_v27  ;;  %349 = vst.msk [vmem:[%s708_s4 + $0x60] sm:$0xff] %vm75_vm1, %v333_v34  ;;  %v651_v44 = vadd.f32 %v542_v11, %v172_v39 }
  0xad   :  { %v326_v31 = vmul.f32 %v310_v21, %v568_v33  ;;  %v255_v36 = vadd.f32 2.0, %v445_v37  ;;  %456 = vpow2.f32 %v223_v35  ;;  %v447_v40 = vpop.eup %446  ;;  %v204_v41 = vmin.f32 %v633_v28, 20.0 }
  0xae   :  { %338 = vst.msk [vmem:[%s708_s4 + $0x8] sm:$0xff] %vm75_vm1, %v322_v24  ;;  %v267_v32 = vmul.f32 %v443_v27, %v251_v30  ;;  %v244_v43 = vadd.f32 2.0, %v447_v40  ;;  %v208_v52 = vmin.f32 %v651_v44, 20.0 }
  0xaf   :  { %v449_v42 = vpop.eup %448  ;;  %342 = vst.msk [vmem:[%s708_s4 + $0x28] sm:$0xff] %vm75_vm1, %v326_v31  ;;  %v271_v33 = vmul.f32 %v445_v37, %v255_v36  ;;  %v231_v47 = vmul.f32 1.442695, %v204_v41 }
  0xb0   :  { %v451_v10 = vpop.eup %450  ;;  %v314_v45 = vmul.f32 %v449_v42, %v266_v57  ;;  %v283_v46 = vadd.f32 2.0, %v267_v32  ;;  %v260_v51 = vmul.f32 %v447_v40, %v244_v43 }
  0xb1   :  { %v453_v48 = vpop.eup %452  ;;  %v318_v49 = vmul.f32 %v451_v10, %v270_v17  ;;  %v287_v50 = vadd.f32 2.0, %v271_v33  ;;  %v239_v17 = vmul.f32 1.442695, %v208_v52 }
  0xb2   :  { %v455_v53 = vpop.eup %454  ;;  %v330_v54 = vmul.f32 %v314_v45, %v579_v55  ;;  %v307_v60 = vmul.f32 %v453_v48, %v259_v4  ;;  %458 = vrcp.f32 %v283_v46  ;;  %v276_v63 = vadd.f32 2.0, %v260_v51 }
  0xb3   :  { %v457_v61 = vpop.eup %456  ;;  %v334_v62 = vmul.f32 %v318_v49, %v582_v56  ;;  %v311_v11 = vmul.f32 %v455_v53, %v263_v12  ;;  %460 = vrcp.f32 %v287_v50 }
  0xb4   :  { %346 = vst.msk [vmem:[%s708_s4 + $0x48] sm:$0xff] %vm75_vm1, %v330_v54  ;;  %v323_v57 = vmul.f32 %v307_v60, %v585_v58  ;;  %v248_v16 = vadd.f32 2.0, %v457_v61  ;;  %462 = vpow2.f32 %v231_v47 }
  0xb5   :  { %350 = vst.msk [vmem:[%s708_s4 + $0x68] sm:$0xff] %vm75_vm1, %v334_v62  ;;  %v327_v55 = vmul.f32 %v311_v11, %v588_v59  ;;  %464 = vrcp.f32 %v276_v63 }
  0xb6   :  { %339 = vst.msk [vmem:[%s708_s4 + $0x10] sm:$0xff] %vm75_vm1, %v323_v57  ;;  %v264_v56 = vmul.f32 %v457_v61, %v248_v16  ;;  %466 = vpow2.f32 %v239_v17 }
  0xb7   :  { %343 = vst.msk [vmem:[%s708_s4 + $0x30] sm:$0xff] %vm75_vm1, %v327_v55 }
  0xb8   :  { %v459_v58 = vpop.eup %458  ;;  %v280_v0 = vadd.f32 2.0, %v264_v56 }
  0xb9   :  { %v461_v1 = vpop.eup %460  ;;  %v315_v2 = vmul.f32 %v459_v58, %v267_v32 }
  0xba   :  { %v463_v3 = vpop.eup %462  ;;  %v319_v4 = vmul.f32 %v461_v1, %v271_v33  ;;  %468 = vrcp.f32 %v280_v0 }
  0xbb   :  { %v465_v59 = vpop.eup %464  ;;  %v331_v6 = vmul.f32 %v315_v2, %v598_v26  ;;  %v252_v7 = vadd.f32 2.0, %v463_v3 }
  0xbc   :  { %v467_v8 = vpop.eup %466  ;;  %v335_v9 = vmul.f32 %v319_v4, %v601_v29  ;;  %v308_v12 = vmul.f32 %v465_v59, %v260_v51 }
  0xbd   :  { %347 = vst.msk [vmem:[%s708_s4 + $0x50] sm:$0xff] %vm75_vm1, %v331_v6  ;;  %v268_v13 = vmul.f32 %v463_v3, %v252_v7  ;;  %v256_v14 = vadd.f32 2.0, %v467_v8 }
  0xbe   :  { %351 = vst.msk [vmem:[%s708_s4 + $0x70] sm:$0xff] %vm75_vm1, %v335_v9  ;;  %v324_v15 = vmul.f32 %v308_v12, %v605_v38 }
  0xbf   :  { %v284_v26 = vadd.f32 2.0, %v268_v13  ;;  %v272_v18 = vmul.f32 %v467_v8, %v256_v14 }
  0xc0   :  { %v469_v19 = vpop.eup %468  ;;  %340 = vst.msk [vmem:[%s708_s4 + $0x18] sm:$0xff] %vm75_vm1, %v324_v15 }
  0xc1   :  { %v312_v29 = vmul.f32 %v469_v19, %v264_v56  ;;  %470 = vrcp.f32 %v284_v26  ;;  %v288_v20 = vadd.f32 2.0, %v272_v18 }
  0xc3   :  { %v328_v22 = vmul.f32 %v312_v29, %v621_v5  ;;  %472 = vrcp.f32 %v288_v20 }
  0xc5   :  { %344 = vst.msk [vmem:[%s708_s4 + $0x38] sm:$0xff] %vm75_vm1, %v328_v22 }
  0xc7   :  { %v471_v38 = vpop.eup %470 }
  0xc8   :  { %v316_v23 = vmul.f32 %v471_v38, %v268_v13 }
  0xc9   :  { %v473_v25 = vpop.eup %472 }
  0xca   :  { %v332_v27 = vmul.f32 %v316_v23, %v633_v28  ;;  %v320_v34 = vmul.f32 %v473_v25, %v272_v18 }
  0xcc   :  { %348 = vst.msk [vmem:[%s708_s4 + $0x58] sm:$0xff] %vm75_vm1, %v332_v27  ;;  %v336_v21 = vmul.f32 %v320_v34, %v651_v44 }
  0xce   :  { %352 = vst.msk [vmem:[%s708_s4 + $0x78] sm:$0xff] %vm75_vm1, %v336_v21 }

// kernel: _lambda_.10
= control target key start
LH: loop header
LB: loop body
LE: loop exit
PB: predicated region body
PF: predicated region fallthrough
CT: control target
= control target key end

     0   :  { %vm122_vm0 = vcmask 1041408   ;;  %vm97_vm1 = vcmask 293888   ;;  %vm391_vm2 = vcmask 31744   ;;  %s850_s1 = inlined_call_operand.vmem [shape: bf16[36,4], index: 1, kind: input, shape index: {}]   ;;  %s851_s2 = inlined_call_operand.vmem [shape: f32[1,4], index: 2, kind: input, shape index: {}]   ;;  %s852_s3 = inlined_call_operand.vmem [shape: f32[1,4], index: 3, kind: input, shape index: {}]   ;;  %s853_s0 = inlined_call_operand.vmem [shape: bf16[128,36], index: 0, kind: input, shape index: {}]   ;;  %s854_s4 = inlined_call_operand.vmem [shape: f32[128,4], index: 4, kind: input, shape index: {}]   ;;  %s855_s5 = inlined_call_operand.vmem [shape: f32[128,4], index: 5, kind: output, shape index: {}]  }
   0x1   :  { %v41_v0 = vld [vmem:[%s850_s1 + $0x10] sm:$0x3]  ;;  %v469_v4 = vld [vmem:[%s850_s1 + $0x8] sm:$0xff]  ;;  %v468_v5 = vld [vmem:[%s850_s1] sm:$0xff] }
   0x2   :  { %v91_v1 = vunpack.c.l.b16 %v41_v0  ;;  %v460_v6 = vld [vmem:[%s853_s0] sm:$0xff]  ;;  %v462_v7 = vld [vmem:[%s853_s0 + $0x10] sm:$0xff]  ;;  %v461_v10 = vld [vmem:[%s853_s0 + $0x8] sm:$0xff] }
   0x3   :  { %v464_v8 = vld [vmem:[%s853_s0 + $0x20] sm:$0xff]  ;;  %v466_v9 = vld [vmem:[%s853_s0 + $0x30] sm:$0xff]  ;;  %v463_v11 = vld [vmem:[%s853_s0 + $0x18] sm:$0xff] }
   0x4   :  { %v94_v2 = vpack.c.b16 %v91_v1, %v91_v1  ;;  %v465_v12 = vld [vmem:[%s853_s0 + $0x28] sm:$0xff]  ;;  %v467_v13 = vld [vmem:[%s853_s0 + $0x38] sm:$0xff]  ;;  %v619_v14 = vld [vmem:[%s851_s2] ss:$0 sm:$0xff] }
   0x5   :  { %v624_v15 = vld [vmem:[%s852_s3] ss:$0 sm:$0xff] }
   0x6   :  { %v124_v3 = vsel %vm122_vm0, %v94_v2, 0 }
   0x7   :  { %131 = vmatpush.bf16.msra.mxu0 %v124_v3  ;;  %470 = vmatpush.bf16.msra.mxu1 %v124_v3 }
   0x8   :  { %471 = vmatpush.bf16.msra.mxu2 %v124_v3  ;;  %472 = vmatpush.bf16.msra.mxu3 %v124_v3 }
   0xb   :  { %132 = vmatpush.bf16.msra.mxu0 %v469_v4  ;;  %473 = vmatpush.bf16.msra.mxu1 %v469_v4 }
   0xc   :  { %474 = vmatpush.bf16.msra.mxu2 %v469_v4  ;;  %475 = vmatpush.bf16.msra.mxu3 %v469_v4 }
   0xf   :  { %133 = vmatpush.bf16.msra.mxu0 %v468_v5  ;;  %476 = vmatpush.bf16.msra.mxu1 %v468_v5 }
  0x10   :  { %477 = vmatpush.bf16.msra.mxu2 %v468_v5  ;;  %478 = vmatpush.bf16.msra.mxu3 %v468_v5 }
  0x12   :  { %452 = vmatmul.msk.bf16.vlgmr.msra.gmra.mxu0 %vm97_vm1, %v460_v6  ;;  %454 = vmatmul.msk.bf16.vlgmr.msra.gmra.mxu1 %vm97_vm1, %v462_v7 }
  0x13   :  { %456 = vmatmul.msk.bf16.vlgmr.msra.gmra.mxu2 %vm97_vm1, %v464_v8  ;;  %458 = vmatmul.msk.bf16.vlgmr.msra.gmra.mxu3 %vm97_vm1, %v466_v9 }
  0x22   :  { %453 = vmatmul.msk.bf16.gmra.mxu0 %vm97_vm1, %v461_v10  ;;  %455 = vmatmul.msk.bf16.gmra.mxu1 %vm97_vm1, %v463_v11 }
  0x23   :  { %457 = vmatmul.msk.bf16.gmra.mxu2 %vm97_vm1, %v465_v12  ;;  %459 = vmatmul.msk.bf16.gmra.mxu3 %vm97_vm1, %v467_v13 }
  0x8f   :  { %v135_v16 = vpop.f32.mrf.mxu0  ;;  %v145_v17 = vpop.f32.mrf.mxu1 }
  0x90   :  { %v179_v18 = vmul.f32 %v619_v14, %v135_v16  ;;  %v183_v19 = vmul.f32 %v619_v14, %v145_v17 }
  0x92   :  { %v629_v20 = vadd.f32 %v624_v15, %v179_v18  ;;  %v632_v21 = vadd.f32 %v624_v15, %v183_v19 }
  0x94   :  { %v215_v22 = vmin.f32 %v629_v20, 20.0  ;;  %v219_v23 = vmin.f32 %v632_v21, 20.0 }
  0x96   :  { %v231_v24 = vmul.f32 1.442695, %v215_v22  ;;  %v239_v25 = vmul.f32 1.442695, %v219_v23  ;;  %v155_v26 = vpop.f32.mrf.mxu2  ;;  %v165_v27 = vpop.f32.mrf.mxu3 }
  0x97   :  { %v187_v28 = vmul.f32 %v619_v14, %v155_v26  ;;  %v191_v29 = vmul.f32 %v619_v14, %v165_v27  ;;  %v137_v30 = vpop.f32.mrf.mxu0  ;;  %v147_v31 = vpop.f32.mrf.mxu1 }
  0x98   :  { %481 = vpow2.f32 %v231_v24  ;;  %v180_v32 = vmul.f32 %v619_v14, %v137_v30  ;;  %v184_v33 = vmul.f32 %v619_v14, %v147_v31 }
  0x99   :  { %483 = vpow2.f32 %v239_v25  ;;  %v641_v34 = vadd.f32 %v624_v15, %v187_v28  ;;  %v644_v35 = vadd.f32 %v624_v15, %v191_v29 }
  0x9a   :  { %v647_v36 = vadd.f32 %v624_v15, %v180_v32  ;;  %v650_v37 = vadd.f32 %v624_v15, %v184_v33 }
  0x9b   :  { %v223_v38 = vmin.f32 %v641_v34, 20.0  ;;  %v227_v39 = vmin.f32 %v644_v35, 20.0 }
  0x9c   :  { %v216_v40 = vmin.f32 %v647_v36, 20.0  ;;  %v220_v41 = vmin.f32 %v650_v37, 20.0 }
  0x9d   :  { %v247_v42 = vmul.f32 1.442695, %v223_v38  ;;  %v255_v43 = vmul.f32 1.442695, %v227_v39 }
  0x9e   :  { %v482_v44 = vpop.eup %481  ;;  %v233_v45 = vmul.f32 1.442695, %v216_v40  ;;  %v241_v46 = vmul.f32 1.442695, %v220_v41  ;;  %v157_v47 = vpop.f32.mrf.mxu2 }
  0x9f   :  { %v167_v48 = vpop.f32.mrf.mxu3  ;;  %v484_v49 = vpop.eup %483  ;;  %v263_v50 = vadd.f32 2.0, %v482_v44  ;;  %485 = vpow2.f32 %v247_v42  ;;  %v188_v51 = vmul.f32 %v619_v14, %v157_v47 }
  0xa0   :  { %v192_v52 = vmul.f32 %v619_v14, %v167_v48  ;;  %v140_v53 = vpop.f32.mrf.mxu0  ;;  %v150_v54 = vpop.f32.mrf.mxu1  ;;  %v267_v55 = vadd.f32 2.0, %v484_v49  ;;  %487 = vpow2.f32 %v255_v43  ;;  %v359_v48 = vld [vmem:[%s854_s4] sm:$0xff] }
  0xa1   :  { %v181_v56 = vmul.f32 %v619_v14, %v140_v53  ;;  %v185_v57 = vmul.f32 %v619_v14, %v150_v54  ;;  %v279_v58 = vmul.f32 %v482_v44, %v263_v50  ;;  %489 = vpow2.f32 %v233_v45  ;;  %v363_v54 = vld [vmem:[%s854_s4 + $0x20] sm:$0xff] }
  0xa2   :  { %v661_v59 = vadd.f32 %v624_v15, %v188_v51  ;;  %v664_v60 = vadd.f32 %v624_v15, %v192_v52  ;;  %v283_v61 = vmul.f32 %v484_v49, %v267_v55  ;;  %491 = vpow2.f32 %v241_v46 }
  0xa3   :  { %v667_v62 = vadd.f32 %v624_v15, %v181_v56  ;;  %v670_v63 = vadd.f32 %v624_v15, %v185_v57  ;;  %v295_v0 = vadd.f32 2.0, %v279_v58 }
  0xa4   :  { %v224_v1 = vmin.f32 %v661_v59, 20.0  ;;  %v228_v2 = vmin.f32 %v664_v60, 20.0  ;;  %v299_v3 = vadd.f32 2.0, %v283_v61 }
  0xa5   :  { %v217_v4 = vmin.f32 %v667_v62, 20.0  ;;  %v221_v5 = vmin.f32 %v670_v63, 20.0  ;;  %v486_v6 = vpop.eup %485  ;;  %493 = vrcp.f32 %v295_v0 }
  0xa6   :  { %v249_v7 = vmul.f32 1.442695, %v224_v1  ;;  %v257_v8 = vmul.f32 1.442695, %v228_v2  ;;  %v488_v9 = vpop.eup %487  ;;  %495 = vrcp.f32 %v299_v3  ;;  %v271_v10 = vadd.f32 2.0, %v486_v6  ;;  %v160_v13 = vpop.f32.mrf.mxu2 }
  0xa7   :  { %v235_v11 = vmul.f32 1.442695, %v217_v4  ;;  %v243_v12 = vmul.f32 1.442695, %v221_v5  ;;  %v170_v16 = vpop.f32.mrf.mxu3  ;;  %v490_v17 = vpop.eup %489  ;;  %v275_v18 = vadd.f32 2.0, %v488_v9  ;;  %v189_v19 = vmul.f32 %v619_v14, %v160_v13 }
  0xa8   :  { %497 = vpow2.f32 %v249_v7  ;;  %v193_v22 = vmul.f32 %v619_v14, %v170_v16  ;;  %v142_v23 = vpop.f32.mrf.mxu0  ;;  %v492_v24 = vpop.eup %491  ;;  %v287_v25 = vmul.f32 %v486_v6, %v271_v10  ;;  %v264_v26 = vadd.f32 2.0, %v490_v17 }
  0xa9   :  { %499 = vpow2.f32 %v257_v8  ;;  %v182_v27 = vmul.f32 %v619_v14, %v142_v23  ;;  %v291_v28 = vmul.f32 %v488_v9, %v275_v18  ;;  %v268_v29 = vadd.f32 2.0, %v492_v24  ;;  %v152_v1 = vpop.f32.mrf.mxu1  ;;  %v367_v23 = vld [vmem:[%s854_s4 + $0x40] sm:$0xff] }
  0xaa   :  { %501 = vpow2.f32 %v235_v11  ;;  %v680_v30 = vadd.f32 %v624_v15, %v189_v19  ;;  %v303_v31 = vadd.f32 2.0, %v287_v25  ;;  %v682_v32 = vmul.f32 %v490_v17, %v264_v26 }
  0xab   :  { %503 = vpow2.f32 %v243_v12  ;;  %v685_v33 = vadd.f32 %v624_v15, %v193_v22  ;;  %v494_v38 = vpop.eup %493  ;;  %v307_v39 = vadd.f32 2.0, %v291_v28  ;;  %v687_v40 = vmul.f32 %v492_v24, %v268_v29 }
  0xac   :  { %v225_v41 = vmin.f32 %v680_v30, 20.0  ;;  %v691_v42 = vadd.f32 %v624_v15, %v182_v27  ;;  %v496_v43 = vpop.eup %495  ;;  %v327_v44 = vmul.f32 %v494_v38, %v279_v58  ;;  %505 = vrcp.f32 %v303_v31  ;;  %v371_v31 = vld [vmem:[%s854_s4 + $0x60] sm:$0xff] }
  0xad   :  { %v296_v45 = vadd.f32 2.0, %v682_v32  ;;  %v229_v46 = vmin.f32 %v685_v33, 20.0  ;;  %v331_v49 = vmul.f32 %v496_v43, %v283_v61  ;;  %507 = vrcp.f32 %v307_v39  ;;  %v360_v43 = vld [vmem:[%s854_s4 + $0x8] sm:$0xff] }
  0xae   :  { %v498_v47 = vpop.eup %497  ;;  %v300_v50 = vadd.f32 2.0, %v687_v40  ;;  %v251_v51 = vmul.f32 1.442695, %v225_v41  ;;  %v343_v53 = vmul.f32 %v327_v44, %v629_v20  ;;  %v218_v61 = vmin.f32 %v691_v42, 20.0  ;;  %v162_v20 = vpop.f32.mrf.mxu2 }
  0xaf   :  { %v500_v52 = vpop.eup %499  ;;  %509 = vrcp.f32 %v296_v45  ;;  %v272_v55 = vadd.f32 2.0, %v498_v47  ;;  %v259_v56 = vmul.f32 1.442695, %v229_v46  ;;  %v347_v58 = vmul.f32 %v331_v49, %v632_v21 }
  0xb0   :  { %v502_v57 = vpop.eup %501  ;;  %511 = vrcp.f32 %v300_v50  ;;  %v276_v0 = vadd.f32 2.0, %v500_v52  ;;  %v375_v3 = vadd.f32 %v359_v48, %v343_v53  ;;  %v237_v11 = vmul.f32 1.442695, %v218_v61 }
  0xb1   :  { %v504_v2 = vpop.eup %503  ;;  %v288_v4 = vmul.f32 %v498_v47, %v272_v55  ;;  %v265_v5 = vadd.f32 2.0, %v502_v57  ;;  %513 = vpow2.f32 %v251_v51  ;;  %v379_v6 = vadd.f32 %v363_v54, %v347_v58 }
  0xb2   :  { %v705_v7 = vmul.f32 %v500_v52, %v276_v0  ;;  %v269_v8 = vadd.f32 2.0, %v504_v2  ;;  %515 = vpow2.f32 %v259_v56  ;;  %v506_v9 = vpop.eup %505  ;;  %392 = vst.msk [vmem:[%s855_s5] sm:$0xff] %vm391_vm2, %v375_v3  ;;  %v186_v12 = vmul.f32 %v619_v14, %v152_v1 }
  0xb3   :  { %v304_v21 = vadd.f32 2.0, %v288_v4  ;;  %v711_v10 = vmul.f32 %v502_v57, %v265_v5  ;;  %v508_v13 = vpop.eup %507  ;;  %396 = vst.msk [vmem:[%s855_s5 + $0x20] sm:$0xff] %vm391_vm2, %v379_v6  ;;  %v335_v16 = vmul.f32 %v506_v9, %v287_v25  ;;  %v190_v19 = vmul.f32 %v619_v14, %v162_v20  ;;  %v372_v6 = vld [vmem:[%s854_s4 + $0x68] sm:$0xff] }
  0xb4   :  { %v308_v17 = vadd.f32 2.0, %v705_v7  ;;  %v285_v18 = vmul.f32 %v504_v2, %v269_v8  ;;  %v339_v24 = vmul.f32 %v508_v13, %v291_v28  ;;  %v725_v27 = vadd.f32 %v624_v15, %v186_v12 }
  0xb5   :  { %v510_v22 = vpop.eup %509  ;;  %517 = vrcp.f32 %v304_v21  ;;  %v297_v26 = vadd.f32 2.0, %v711_v10  ;;  %v351_v25 = vmul.f32 %v335_v16, %v641_v34  ;;  %v748_v53 = vadd.f32 %v624_v15, %v190_v19 }
  0xb6   :  { %v512_v29 = vpop.eup %511  ;;  %v328_v38 = vmul.f32 %v510_v22, %v682_v32  ;;  %519 = vrcp.f32 %v308_v17  ;;  %v301_v39 = vadd.f32 2.0, %v285_v18  ;;  %v355_v28 = vmul.f32 %v339_v24, %v644_v35  ;;  %v364_v32 = vld [vmem:[%s854_s4 + $0x28] sm:$0xff]  ;;  %v172_v35 = vpop.f32.mrf.mxu3 }
  0xb7   :  { %v514_v41 = vpop.eup %513  ;;  %v332_v44 = vmul.f32 %v512_v29, %v687_v40  ;;  %521 = vrcp.f32 %v297_v26  ;;  %v222_v34 = vmin.f32 %v725_v27, 20.0  ;;  %v383_v46 = vadd.f32 %v367_v23, %v351_v25 }
  0xb8   :  { %v516_v45 = vpop.eup %515  ;;  %v344_v47 = vmul.f32 %v328_v38, %v647_v36  ;;  %523 = vrcp.f32 %v301_v39  ;;  %v273_v48 = vadd.f32 2.0, %v514_v41  ;;  %v387_v49 = vadd.f32 %v371_v31, %v355_v28  ;;  %v369_v39 = vld [vmem:[%s854_s4 + $0x50] sm:$0xff] }
  0xb9   :  { %v348_v50 = vmul.f32 %v332_v44, %v650_v37  ;;  %v277_v51 = vadd.f32 2.0, %v516_v45  ;;  %525 = vpow2.f32 %v237_v11  ;;  %400 = vst.msk [vmem:[%s855_s5 + $0x40] sm:$0xff] %vm391_vm2, %v383_v46  ;;  %v245_v36 = vmul.f32 1.442695, %v222_v34 }
  0xba   :  { %v376_v40 = vadd.f32 %v360_v43, %v344_v47  ;;  %v289_v52 = vmul.f32 %v514_v41, %v273_v48  ;;  %404 = vst.msk [vmem:[%s855_s5 + $0x60] sm:$0xff] %vm391_vm2, %v387_v49  ;;  %v194_v56 = vmul.f32 %v619_v14, %v172_v35  ;;  %v226_v61 = vmin.f32 %v748_v53, 20.0  ;;  %v368_v14 = vld [vmem:[%s854_s4 + $0x48] sm:$0xff]  ;;  %v373_v43 = vld [vmem:[%s854_s4 + $0x70] sm:$0xff] }
  0xbb   :  { %v518_v54 = vpop.eup %517  ;;  %v380_v37 = vadd.f32 %v364_v32, %v348_v50  ;;  %v293_v55 = vmul.f32 %v516_v45, %v277_v51  ;;  %527 = vpow2.f32 %v245_v36  ;;  %v362_v51 = vld [vmem:[%s854_s4 + $0x18] sm:$0xff] }
  0xbc   :  { %v520_v57 = vpop.eup %519  ;;  %393 = vst.msk [vmem:[%s855_s5 + $0x8] sm:$0xff] %vm391_vm2, %v376_v40  ;;  %v336_v58 = vmul.f32 %v518_v54, %v288_v4  ;;  %v305_v0 = vadd.f32 2.0, %v289_v52  ;;  %v769_v5 = vadd.f32 %v624_v15, %v194_v56  ;;  %v253_v9 = vmul.f32 1.442695, %v226_v61 }
  0xbd   :  { %v522_v1 = vpop.eup %521  ;;  %397 = vst.msk [vmem:[%s855_s5 + $0x28] sm:$0xff] %vm391_vm2, %v380_v37  ;;  %v340_v2 = vmul.f32 %v520_v57, %v705_v7  ;;  %v309_v3 = vadd.f32 2.0, %v293_v55  ;;  %v361_v7 = vld [vmem:[%s854_s4 + $0x10] sm:$0xff] }
  0xbe   :  { %v524_v4 = vpop.eup %523  ;;  %v352_v20 = vmul.f32 %v336_v58, %v661_v59  ;;  %v329_v8 = vmul.f32 %v522_v1, %v711_v10  ;;  %529 = vrcp.f32 %v305_v0  ;;  %v230_v12 = vmin.f32 %v769_v5, 20.0  ;;  %v365_v10 = vld [vmem:[%s854_s4 + $0x30] sm:$0xff] }
  0xbf   :  { %v526_v21 = vpop.eup %525  ;;  %v356_v11 = vmul.f32 %v340_v2, %v664_v60  ;;  %v333_v15 = vmul.f32 %v524_v4, %v285_v18  ;;  %531 = vrcp.f32 %v309_v3  ;;  %v374_v2 = vld [vmem:[%s854_s4 + $0x78] sm:$0xff] }
  0xc0   :  { %v384_v59 = vadd.f32 %v368_v14, %v352_v20  ;;  %v345_v13 = vmul.f32 %v329_v8, %v667_v62  ;;  %v266_v16 = vadd.f32 2.0, %v526_v21  ;;  %533 = vpow2.f32 %v253_v9 }
  0xc1   :  { %v388_v17 = vadd.f32 %v372_v6, %v356_v11  ;;  %v349_v60 = vmul.f32 %v333_v15, %v670_v63  ;;  %v261_v19 = vmul.f32 1.442695, %v230_v12  ;;  %v528_v22 = vpop.eup %527 }
  0xc2   :  { %401 = vst.msk [vmem:[%s855_s5 + $0x48] sm:$0xff] %vm391_vm2, %v384_v59  ;;  %v377_v18 = vadd.f32 %v361_v7, %v345_v13  ;;  %v282_v23 = vmul.f32 %v526_v21, %v266_v16  ;;  %v270_v24 = vadd.f32 2.0, %v528_v22 }
  0xc3   :  { %405 = vst.msk [vmem:[%s855_s5 + $0x68] sm:$0xff] %vm391_vm2, %v388_v17  ;;  %v381_v62 = vadd.f32 %v365_v10, %v349_v60  ;;  %535 = vpow2.f32 %v261_v19 }
  0xc4   :  { %v530_v26 = vpop.eup %529  ;;  %394 = vst.msk [vmem:[%s855_s5 + $0x10] sm:$0xff] %vm391_vm2, %v377_v18  ;;  %v298_v63 = vadd.f32 2.0, %v282_v23  ;;  %v286_v31 = vmul.f32 %v528_v22, %v270_v24 }
  0xc5   :  { %v532_v29 = vpop.eup %531  ;;  %398 = vst.msk [vmem:[%s855_s5 + $0x30] sm:$0xff] %vm391_vm2, %v381_v62  ;;  %v337_v25 = vmul.f32 %v530_v26, %v289_v52 }
  0xc6   :  { %v534_v38 = vpop.eup %533  ;;  %v341_v41 = vmul.f32 %v532_v29, %v293_v55  ;;  %537 = vrcp.f32 %v298_v63  ;;  %v302_v44 = vadd.f32 2.0, %v286_v31  ;;  %v366_v55 = vld [vmem:[%s854_s4 + $0x38] sm:$0xff] }
  0xc7   :  { %v353_v28 = vmul.f32 %v337_v25, %v680_v30  ;;  %v274_v34 = vadd.f32 2.0, %v534_v38 }
  0xc8   :  { %v357_v45 = vmul.f32 %v341_v41, %v685_v33  ;;  %539 = vrcp.f32 %v302_v44 }
  0xc9   :  { %v536_v46 = vpop.eup %535  ;;  %v385_v47 = vadd.f32 %v369_v39, %v353_v28  ;;  %v290_v32 = vmul.f32 %v534_v38, %v274_v34 }
  0xca   :  { %v389_v48 = vadd.f32 %v373_v43, %v357_v45  ;;  %v278_v35 = vadd.f32 2.0, %v536_v46 }
  0xcb   :  { %402 = vst.msk [vmem:[%s855_s5 + $0x50] sm:$0xff] %vm391_vm2, %v385_v47  ;;  %v306_v30 = vadd.f32 2.0, %v290_v32 }
  0xcc   :  { %v538_v49 = vpop.eup %537  ;;  %406 = vst.msk [vmem:[%s855_s5 + $0x70] sm:$0xff] %vm391_vm2, %v389_v48  ;;  %v294_v50 = vmul.f32 %v536_v46, %v278_v35 }
  0xcd   :  { %v330_v33 = vmul.f32 %v538_v49, %v282_v23  ;;  %541 = vrcp.f32 %v306_v30 }
  0xce   :  { %v310_v40 = vadd.f32 2.0, %v294_v50  ;;  %v540_v52 = vpop.eup %539 }
  0xcf   :  { %v346_v36 = vmul.f32 %v330_v33, %v691_v42  ;;  %v334_v54 = vmul.f32 %v540_v52, %v286_v31  ;;  %v370_v42 = vld [vmem:[%s854_s4 + $0x58] sm:$0xff] }
  0xd0   :  { %543 = vrcp.f32 %v310_v40 }
  0xd1   :  { %v378_v37 = vadd.f32 %v362_v51, %v346_v36  ;;  %v350_v56 = vmul.f32 %v334_v54, %v725_v27 }
  0xd3   :  { %v542_v57 = vpop.eup %541  ;;  %395 = vst.msk [vmem:[%s855_s5 + $0x18] sm:$0xff] %vm391_vm2, %v378_v37  ;;  %v382_v58 = vadd.f32 %v366_v55, %v350_v56 }
  0xd4   :  { %v338_v0 = vmul.f32 %v542_v57, %v290_v32 }
  0xd5   :  { %399 = vst.msk [vmem:[%s855_s5 + $0x38] sm:$0xff] %vm391_vm2, %v382_v58 }
  0xd6   :  { %v544_v61 = vpop.eup %543  ;;  %v354_v27 = vmul.f32 %v338_v0, %v748_v53 }
  0xd7   :  { %v342_v1 = vmul.f32 %v544_v61, %v294_v50 }
  0xd8   :  { %v386_v14 = vadd.f32 %v370_v42, %v354_v27 }
  0xd9   :  { %v358_v3 = vmul.f32 %v342_v1, %v769_v5 }
  0xda   :  { %403 = vst.msk [vmem:[%s855_s5 + $0x58] sm:$0xff] %vm391_vm2, %v386_v14 }
  0xdb   :  { %v390_v4 = vadd.f32 %v374_v2, %v358_v3 }
  0xdd   :  { %407 = vst.msk [vmem:[%s855_s5 + $0x78] sm:$0xff] %vm391_vm2, %v390_v4 }

// kernel: _lambda_.13
= control target key start
LH: loop header
LB: loop body
LE: loop exit
PB: predicated region body
PF: predicated region fallthrough
CT: control target
= control target key end

     0   :  { %vm116_vm0 = vcmask 1041408   ;;  %vm91_vm1 = vcmask 31744   ;;  %s1393_s0 = inlined_call_operand.vmem [shape: bf16[128,4], index: 0, kind: input, shape index: {}]   ;;  %s1394_s1 = inlined_call_operand.vmem [shape: bf16[128,4], index: 1, kind: input, shape index: {}]   ;;  %s1395_s2 = inlined_call_operand.vmem [shape: bf16[4,4], index: 2, kind: input, shape index: {}]   ;;  %s1396_s3 = inlined_call_operand.vmem [shape: f32[1,4], index: 3, kind: input, shape index: {}]   ;;  %s1397_s4 = inlined_call_operand.vmem [shape: f32[1,4], index: 4, kind: input, shape index: {}]   ;;  %s1398_s5 = inlined_call_operand.vmem [shape: bf16[4,8], index: 5, kind: input, shape index: {}]   ;;  %s1399_s6 = inlined_call_operand.vmem [shape: bf16[4,8], index: 6, kind: input, shape index: {}]   ;;  %s1400_s7 = inlined_call_operand.vmem [shape: f32[1,8], index: 7, kind: input, shape index: {}]   ;;  %s1401_s8 = inlined_call_operand.vmem [shape: f32[1,8], index: 8, kind: input, shape index: {}]   ;;  %s1402_s9 = inlined_call_operand.hbm [shape: f32[128,8], index: 9, kind: output, shape index: {}]  }
   0x1   :  { %v50_v0 = vld [vmem:[%s1395_s2] sm:$0x3]  ;;  %v884_v3 = vld [vmem:[%s1393_s0 + $0x30] sm:$0xff] }
   0x2   :  { %v118_v1 = vsel %vm116_vm0, %v50_v0, 0  ;;  %v878_v2 = vld [vmem:[%s1393_s0] sm:$0xff] }
   0x3   :  { %127 = vmatpush.bf16.msra.mxu0 %v118_v1  ;;  %894 = vmatpush.bf16.msra.mxu3 %v118_v1 }
   0x4   :  { %14 = vsyncpa [#allocation3], 0  ;;  %v879_v4 = vld [vmem:[%s1393_s0 + $0x8] sm:$0xff]  ;;  %v885_v5 = vld [vmem:[%s1393_s0 + $0x38] sm:$0xff]  ;;  %vm755_vm2 = vcmask 64512   ;;  %s778_s28 = sshll.u32 %s1402_s9, 4  ;;  %s779_s28 = int_to_ptr.hbm [resolvable:$true] %s778_s28 }
   0x5   :  { %v880_v6 = vld [vmem:[%s1393_s0 + $0x10] sm:$0xff]  ;;  %v881_v7 = vld [vmem:[%s1393_s0 + $0x18] sm:$0xff]  ;;  %v882_v8 = vld [vmem:[%s1393_s0 + $0x20] sm:$0xff]  ;;  %s1059_s29 = smov 128   ;;  %s1060_s30 = smov 8  }
   0x6   :  { %822 = vmatmul.msk.bf16.vlgmr.msra.gmra.mxu0 %vm91_vm1, %v878_v2  ;;  %828 = vmatmul.msk.bf16.vlgmr.msra.gmra.mxu3 %vm91_vm1, %v884_v3  ;;  %v883_v9 = vld [vmem:[%s1393_s0 + $0x28] sm:$0xff]  ;;  %v378_v10 = vld [vmem:[%s1399_s6] sm:$0x3]  ;;  %v892_v12 = vld [vmem:[%s1394_s1 + $0x30] sm:$0xff] }
   0x7   :  { %v444_v11 = vsel %vm116_vm0, %v378_v10, 0  ;;  %v1158_v13 = vld [vmem:[%s1396_s3] ss:$0 sm:$0xff]  ;;  %v893_v15 = vld [vmem:[%s1394_s1 + $0x38] sm:$0xff]  ;;  %v887_v53 = vld [vmem:[%s1394_s1 + $0x8] sm:$0xff] }
   0x8   :  { %895 = vmatpush.bf16.msrb.mxu3 %v444_v11  ;;  %453 = vmatpush.bf16.msra.mxu1 %v444_v11  ;;  %v1163_v14 = vld [vmem:[%s1397_s4] ss:$0 sm:$0xff] }
   0x9   :  { %v361_v21 = vld [vmem:[%s1398_s5] sm:$0x3] }
   0xa   :  { %v520_v24 = vsel %vm116_vm0, %v361_v21, 0  ;;  %v886_v25 = vld [vmem:[%s1394_s1] sm:$0xff] }
   0xb   :  { %529 = vmatpush.bf16.msra.mxu2 %v520_v24  ;;  %862 = vmatmul.msk.bf16.vlgmr.msra.gmra.mxu1 %vm91_vm1, %v886_v25 }
   0xc   :  { %896 = vmatpush.bf16.msra.mxu3 %v520_v24 }
  0x16   :  { %823 = vmatmul.msk.bf16.gmra.mxu0 %vm91_vm1, %v879_v4  ;;  %829 = vmatmul.msk.bf16.gmra.mxu3 %vm91_vm1, %v885_v5 }
  0x1b   :  { %863 = vmatmul.msk.bf16.gmra.mxu1 %vm91_vm1, %v887_v53 }
  0x26   :  { %824 = vmatmul.msk.bf16.gmra.mxu0 %vm91_vm1, %v880_v6  ;;  %868 = vmatmul.msk.bf16.vlgmr.msrb.gmra.mxu3 %vm91_vm1, %v892_v12 }
  0x36   :  { %825 = vmatmul.msk.bf16.gmra.mxu0 %vm91_vm1, %v881_v7  ;;  %869 = vmatmul.msk.bf16.gmra.mxu3 %vm91_vm1, %v893_v15 }
  0x46   :  { %826 = vmatmul.msk.bf16.gmra.mxu0 %vm91_vm1, %v882_v8 }
  0x56   :  { %827 = vmatmul.msk.bf16.gmra.mxu0 %vm91_vm1, %v883_v9 }
  0x83   :  { %v129_v16 = vpop.f32.mrf.mxu0 }
  0x84   :  { %v173_v17 = vmul.f32 %v1158_v13, %v129_v16 }
  0x86   :  { %v1171_v18 = vadd.f32 %v1163_v14, %v173_v17 }
  0x88   :  { %v209_v19 = vmin.f32 %v1171_v18, 20.0 }
  0x89   :  { %v159_v20 = vpop.f32.mrf.mxu3 }
  0x8a   :  { %v225_v22 = vmul.f32 1.442695, %v209_v19  ;;  %v185_v23 = vmul.f32 %v1158_v13, %v159_v20 }
  0x8b   :  { %v131_v26 = vpop.f32.mrf.mxu0 }
  0x8c   :  { %904 = vpow2.f32 %v225_v22  ;;  %v1183_v27 = vadd.f32 %v1163_v14, %v185_v23  ;;  %v174_v28 = vmul.f32 %v1158_v13, %v131_v26 }
  0x8e   :  { %v221_v29 = vmin.f32 %v1183_v27, 20.0  ;;  %v1189_v30 = vadd.f32 %v1163_v14, %v174_v28 }
  0x90   :  { %v249_v31 = vmul.f32 1.442695, %v221_v29  ;;  %v210_v32 = vmin.f32 %v1189_v30, 20.0 }
  0x91   :  { %v161_v33 = vpop.f32.mrf.mxu3 }
  0x92   :  { %v905_v34 = vpop.eup %904  ;;  %906 = vpow2.f32 %v249_v31  ;;  %v227_v35 = vmul.f32 1.442695, %v210_v32  ;;  %v186_v36 = vmul.f32 %v1158_v13, %v161_v33 }
  0x93   :  { %v257_v37 = vadd.f32 2.0, %v905_v34  ;;  %v134_v38 = vpop.f32.mrf.mxu0 }
  0x94   :  { %908 = vpow2.f32 %v227_v35  ;;  %v1194_v39 = vadd.f32 %v1163_v14, %v186_v36  ;;  %v175_v40 = vmul.f32 %v1158_v13, %v134_v38 }
  0x95   :  { %v273_v41 = vmul.f32 %v905_v34, %v257_v37  ;;  %v888_v37 = vld [vmem:[%s1394_s1 + $0x10] sm:$0xff] }
  0x96   :  { %v222_v42 = vmin.f32 %v1194_v39, 20.0  ;;  %v1199_v43 = vadd.f32 %v1163_v14, %v175_v40  ;;  %864 = vmatmul.msk.bf16.gmra.mxu1 %vm91_vm1, %v888_v37 }
  0x97   :  { %v289_v44 = vadd.f32 2.0, %v273_v41 }
  0x98   :  { %v907_v45 = vpop.eup %906  ;;  %v251_v46 = vmul.f32 1.442695, %v222_v42  ;;  %v211_v47 = vmin.f32 %v1199_v43, 20.0 }
  0x99   :  { %v269_v48 = vadd.f32 2.0, %v907_v45  ;;  %v164_v49 = vpop.f32.mrf.mxu3 }
  0x9a   :  { %v909_v50 = vpop.eup %908  ;;  %910 = vpow2.f32 %v251_v46  ;;  %v229_v51 = vmul.f32 1.442695, %v211_v47  ;;  %v187_v52 = vmul.f32 %v1158_v13, %v164_v49 }
  0x9b   :  { %912 = vrcp.f32 %v289_v44  ;;  %v285_v54 = vmul.f32 %v907_v45, %v269_v48  ;;  %v258_v55 = vadd.f32 2.0, %v909_v50  ;;  %v136_v56 = vpop.f32.mrf.mxu0 }
  0x9c   :  { %914 = vpow2.f32 %v229_v51  ;;  %v1207_v57 = vadd.f32 %v1163_v14, %v187_v52  ;;  %v176_v58 = vmul.f32 %v1158_v13, %v136_v56 }
  0x9d   :  { %v301_v59 = vadd.f32 2.0, %v285_v54  ;;  %v274_v60 = vmul.f32 %v909_v50, %v258_v55 }
  0x9e   :  { %v223_v61 = vmin.f32 %v1207_v57, 20.0  ;;  %v1213_v62 = vadd.f32 %v1163_v14, %v176_v58 }
  0x9f   :  { %v290_v63 = vadd.f32 2.0, %v274_v60  ;;  %916 = vrcp.f32 %v301_v59 }
  0xa0   :  { %v911_v0 = vpop.eup %910  ;;  %v253_v1 = vmul.f32 1.442695, %v223_v61  ;;  %v212_v2 = vmin.f32 %v1213_v62, 20.0 }
  0xa1   :  { %v913_v3 = vpop.eup %912  ;;  %918 = vrcp.f32 %v290_v63  ;;  %v270_v4 = vadd.f32 2.0, %v911_v0  ;;  %v166_v5 = vpop.f32.mrf.mxu3 }
  0xa2   :  { %v915_v6 = vpop.eup %914  ;;  %920 = vpow2.f32 %v253_v1  ;;  %v231_v7 = vmul.f32 1.442695, %v212_v2  ;;  %v188_v8 = vmul.f32 %v1158_v13, %v166_v5  ;;  %v321_v16 = vmul.f32 %v913_v3, %v273_v41 }
  0xa3   :  { %v286_v9 = vmul.f32 %v911_v0, %v270_v4  ;;  %v259_v10 = vadd.f32 2.0, %v915_v6  ;;  %v139_v11 = vpop.f32.mrf.mxu0 }
  0xa4   :  { %922 = vpow2.f32 %v231_v7  ;;  %v1218_v12 = vadd.f32 %v1163_v14, %v188_v8  ;;  %v177_v15 = vmul.f32 %v1158_v13, %v139_v11  ;;  %v337_v29 = vmul.f32 %v321_v16, %v1171_v18 }
  0xa5   :  { %v302_v17 = vadd.f32 2.0, %v286_v9  ;;  %v275_v19 = vmul.f32 %v915_v6, %v259_v10  ;;  %v917_v20 = vpop.eup %916 }
  0xa6   :  { %v224_v21 = vmin.f32 %v1218_v12, 20.0  ;;  %v1223_v22 = vadd.f32 %v1163_v14, %v177_v15  ;;  %v333_v34 = vmul.f32 %v917_v20, %v285_v54  ;;  %v889_v15 = vld [vmem:[%s1394_s1 + $0x18] sm:$0xff] }
  0xa7   :  { %v919_v23 = vpop.eup %918  ;;  %924 = vrcp.f32 %v302_v17  ;;  %v291_v31 = vadd.f32 2.0, %v275_v19  ;;  %865 = vmatmul.msk.bf16.gmra.mxu1 %vm91_vm1, %v889_v15 }
  0xa8   :  { %v921_v24 = vpop.eup %920  ;;  %v322_v25 = vmul.f32 %v919_v23, %v274_v60  ;;  %v255_v26 = vmul.f32 1.442695, %v224_v21  ;;  %v213_v28 = vmin.f32 %v1223_v22, 20.0 }
  0xa9   :  { %v271_v32 = vadd.f32 2.0, %v921_v24 }
  0xaa   :  { %v923_v33 = vpop.eup %922  ;;  %v338_v35 = vmul.f32 %v322_v25, %v1189_v30  ;;  %926 = vpow2.f32 %v255_v26  ;;  %v233_v36 = vmul.f32 1.442695, %v213_v28  ;;  %v349_v30 = vmul.f32 %v333_v34, %v1183_v27 }
  0xab   :  { %v287_v38 = vmul.f32 %v921_v24, %v271_v32  ;;  %v260_v40 = vadd.f32 2.0, %v923_v33  ;;  %v141_v41 = vpop.f32.mrf.mxu0 }
  0xac   :  { %928 = vpow2.f32 %v233_v36  ;;  %v178_v42 = vmul.f32 %v1158_v13, %v141_v41  ;;  %v353_v44 = vpack.c.bf16 %v338_v35, %v337_v29 }
  0xad   :  { %v925_v18 = vpop.eup %924  ;;  %930 = vrcp.f32 %v291_v31  ;;  %v303_v45 = vadd.f32 2.0, %v287_v38  ;;  %v276_v46 = vmul.f32 %v923_v33, %v260_v40 }
  0xae   :  { %v334_v47 = vmul.f32 %v925_v18, %v286_v9  ;;  %v1235_v48 = vadd.f32 %v1163_v14, %v178_v42  ;;  %870 = vmatmul.msk.bf16.vlgmr.msra.gmra.mxu2 %vm91_vm1, %v353_v44 }
  0xaf   :  { %v292_v49 = vadd.f32 2.0, %v276_v46  ;;  %932 = vrcp.f32 %v303_v45 }
  0xb0   :  { %v927_v50 = vpop.eup %926  ;;  %v350_v51 = vmul.f32 %v334_v47, %v1194_v39  ;;  %v214_v52 = vmin.f32 %v1235_v48, 20.0 }
  0xb1   :  { %934 = vrcp.f32 %v292_v49  ;;  %v272_v53 = vadd.f32 2.0, %v927_v50 }
  0xb2   :  { %v929_v54 = vpop.eup %928  ;;  %v359_v55 = vpack.c.bf16 %v350_v51, %v349_v30  ;;  %v235_v56 = vmul.f32 1.442695, %v214_v52  ;;  %v890_v30 = vld [vmem:[%s1394_s1 + $0x20] sm:$0xff] }
  0xb3   :  { %v931_v58 = vpop.eup %930  ;;  %v288_v27 = vmul.f32 %v927_v50, %v272_v53  ;;  %v261_v59 = vadd.f32 2.0, %v929_v54  ;;  %v144_v60 = vpop.f32.mrf.mxu0 }
  0xb4   :  { %936 = vpow2.f32 %v235_v56  ;;  %v179_v61 = vmul.f32 %v1158_v13, %v144_v60  ;;  %876 = vmatmul.msk.bf16.vlgmr.msra.gmra.mxu3 %vm91_vm1, %v359_v55  ;;  %v323_v1 = vmul.f32 %v931_v58, %v275_v19 }
  0xb5   :  { %v304_v63 = vadd.f32 2.0, %v288_v27  ;;  %v277_v0 = vmul.f32 %v929_v54, %v261_v59  ;;  %v933_v39 = vpop.eup %932 }
  0xb6   :  { %v1243_v2 = vadd.f32 %v1163_v14, %v179_v61  ;;  %v339_v8 = vmul.f32 %v323_v1, %v1199_v43  ;;  %v335_v9 = vmul.f32 %v933_v39, %v287_v38 }
  0xb7   :  { %v935_v3 = vpop.eup %934  ;;  %938 = vrcp.f32 %v304_v63  ;;  %v293_v6 = vadd.f32 2.0, %v277_v0  ;;  %866 = vmatmul.msk.bf16.gmra.mxu1 %vm91_vm1, %v890_v30 }
  0xb8   :  { %v324_v4 = vmul.f32 %v935_v3, %v276_v46  ;;  %v215_v5 = vmin.f32 %v1243_v2, 20.0  ;;  %v351_v43 = vmul.f32 %v335_v9, %v1207_v57 }
  0xba   :  { %v937_v7 = vpop.eup %936  ;;  %v340_v10 = vmul.f32 %v324_v4, %v1213_v62  ;;  %v237_v11 = vmul.f32 1.442695, %v215_v5 }
  0xbb   :  { %v262_v16 = vadd.f32 2.0, %v937_v7  ;;  %v146_v17 = vpop.f32.mrf.mxu0 }
  0xbc   :  { %940 = vpow2.f32 %v237_v11  ;;  %v180_v19 = vmul.f32 %v1158_v13, %v146_v17  ;;  %v354_v20 = vpack.c.bf16 %v340_v10, %v339_v8  ;;  %v891_v8 = vld [vmem:[%s1394_s1 + $0x28] sm:$0xff] }
  0xbd   :  { %v939_v21 = vpop.eup %938  ;;  %942 = vrcp.f32 %v293_v6  ;;  %v278_v23 = vmul.f32 %v937_v7, %v262_v16 }
  0xbe   :  { %v336_v24 = vmul.f32 %v939_v21, %v288_v27  ;;  %v200_v62 = vadd.f32 %v1163_v14, %v180_v19  ;;  %871 = vmatmul.msk.bf16.gmra.mxu2 %vm91_vm1, %v354_v20 }
  0xbf   :  { %v294_v25 = vadd.f32 2.0, %v278_v23 }
  0xc0   :  { %v352_v26 = vmul.f32 %v336_v24, %v1218_v12  ;;  %v216_v28 = vmin.f32 %v200_v62, 20.0 }
  0xc1   :  { %944 = vrcp.f32 %v294_v25 }
  0xc2   :  { %v941_v29 = vpop.eup %940  ;;  %v239_v31 = vmul.f32 1.442695, %v216_v28  ;;  %v360_v32 = vpack.c.bf16 %v352_v26, %v351_v43 }
  0xc3   :  { %v943_v33 = vpop.eup %942  ;;  %v263_v34 = vadd.f32 2.0, %v941_v29  ;;  %v149_v35 = vpop.f32.mrf.mxu0 }
  0xc4   :  { %946 = vpow2.f32 %v239_v31  ;;  %v181_v36 = vmul.f32 %v1158_v13, %v149_v35  ;;  %877 = vmatmul.msk.bf16.gmra.mxu3 %vm91_vm1, %v360_v32  ;;  %v325_v37 = vmul.f32 %v943_v33, %v277_v0 }
  0xc5   :  { %v279_v57 = vmul.f32 %v941_v29, %v263_v34 }
  0xc6   :  { %v1260_v38 = vadd.f32 %v1163_v14, %v181_v36  ;;  %v341_v18 = vmul.f32 %v325_v37, %v1223_v22 }
  0xc7   :  { %v945_v40 = vpop.eup %944  ;;  %v295_v42 = vadd.f32 2.0, %v279_v57  ;;  %867 = vmatmul.msk.bf16.gmra.mxu1 %vm91_vm1, %v891_v8 }
  0xc8   :  { %v326_v12 = vmul.f32 %v945_v40, %v278_v23  ;;  %v217_v41 = vmin.f32 %v1260_v38, 20.0 }
  0xca   :  { %v947_v44 = vpop.eup %946  ;;  %v342_v45 = vmul.f32 %v326_v12, %v1235_v48  ;;  %v241_v46 = vmul.f32 1.442695, %v217_v41 }
  0xcb   :  { %v264_v47 = vadd.f32 2.0, %v947_v44  ;;  %v151_v49 = vpop.f32.mrf.mxu0 }
  0xcc   :  { %948 = vpow2.f32 %v241_v46  ;;  %v182_v50 = vmul.f32 %v1158_v13, %v151_v49  ;;  %v355_v51 = vpack.c.bf16 %v342_v45, %v341_v18 }
  0xcd   :  { %950 = vrcp.f32 %v295_v42  ;;  %v280_v52 = vmul.f32 %v947_v44, %v264_v47  ;;  %v485_v42 = vpop.f32.mrf.mxu3  ;;  %v455_v44 = vpop.f32.mrf.mxu1  ;;  %v1290_v47 = vld [vmem:[%s1400_s7] ss:$0 sm:$0xff]  ;;  %s1058_s7 = smov [#allocation2]  }
  0xce   :  { %v202_v53 = vadd.f32 %v1163_v14, %v182_v50  ;;  %872 = vmatmul.msk.bf16.gmra.mxu2 %vm91_vm1, %v355_v51  ;;  %v1295_v51 = vld [vmem:[%s1401_s8] ss:$0 sm:$0xff]  ;;  %s776_s8 = sshll.u32 %s1058_s7, 4  ;;  %s777_s8 = int_to_ptr.vmem [resolvable:$true] %s776_s8 }
  0xcf   :  { %v296_v22 = vadd.f32 2.0, %v280_v52 }
  0xd0   :  { %v218_v48 = vmin.f32 %v202_v53, 20.0 }
  0xd1   :  { %952 = vrcp.f32 %v296_v22 }
  0xd2   :  { %v949_v54 = vpop.eup %948  ;;  %v243_v55 = vmul.f32 1.442695, %v218_v48 }
  0xd3   :  { %v951_v56 = vpop.eup %950  ;;  %v265_v58 = vadd.f32 2.0, %v949_v54  ;;  %v154_v27 = vpop.f32.mrf.mxu0 }
  0xd4   :  { %954 = vpow2.f32 %v243_v55  ;;  %v183_v59 = vmul.f32 %v1158_v13, %v154_v27  ;;  %v327_v61 = vmul.f32 %v951_v56, %v279_v57 }
  0xd5   :  { %v281_v60 = vmul.f32 %v949_v54, %v265_v58  ;;  %v457_v45 = vpop.f32.mrf.mxu1 }
  0xd6   :  { %v203_v63 = vadd.f32 %v1163_v14, %v183_v59  ;;  %v343_v5 = vmul.f32 %v327_v61, %v1243_v2 }
  0xd7   :  { %v953_v0 = vpop.eup %952  ;;  %v297_v3 = vadd.f32 2.0, %v281_v60 }
  0xd8   :  { %v328_v39 = vmul.f32 %v953_v0, %v280_v52  ;;  %v219_v1 = vmin.f32 %v203_v63, 20.0 }
  0xda   :  { %v955_v4 = vpop.eup %954  ;;  %v344_v6 = vmul.f32 %v328_v39, %v200_v62  ;;  %v245_v7 = vmul.f32 1.442695, %v219_v1 }
  0xdb   :  { %v266_v9 = vadd.f32 2.0, %v955_v4  ;;  %v156_v10 = vpop.f32.mrf.mxu0 }
  0xdc   :  { %956 = vpow2.f32 %v245_v7  ;;  %v184_v11 = vmul.f32 %v1158_v13, %v156_v10  ;;  %v356_v15 = vpack.c.bf16 %v344_v6, %v343_v5 }
  0xdd   :  { %958 = vrcp.f32 %v297_v3  ;;  %v282_v16 = vmul.f32 %v955_v4, %v266_v9  ;;  %v460_v30 = vpop.f32.mrf.mxu1 }
  0xde   :  { %v204_v17 = vadd.f32 %v1163_v14, %v184_v11  ;;  %873 = vmatmul.msk.bf16.gmra.mxu2 %vm91_vm1, %v356_v15 }
  0xdf   :  { %v298_v2 = vadd.f32 2.0, %v282_v16 }
  0xe0   :  { %v220_v19 = vmin.f32 %v204_v17, 20.0 }
  0xe1   :  { %960 = vrcp.f32 %v298_v2 }
  0xe2   :  { %v957_v20 = vpop.eup %956  ;;  %v247_v21 = vmul.f32 1.442695, %v220_v19 }
  0xe3   :  { %v959_v23 = vpop.eup %958  ;;  %v267_v43 = vadd.f32 2.0, %v957_v20 }
  0xe4   :  { %962 = vpow2.f32 %v247_v21  ;;  %v329_v62 = vmul.f32 %v959_v23, %v281_v60 }
  0xe5   :  { %v283_v24 = vmul.f32 %v957_v20, %v267_v43  ;;  %v462_v56 = vpop.f32.mrf.mxu1 }
  0xe6   :  { %v345_v29 = vmul.f32 %v329_v62, %v1260_v38  ;;  %v487_v38 = vpop.f32.mrf.mxu3 }
  0xe7   :  { %v961_v13 = vpop.eup %960  ;;  %v299_v26 = vadd.f32 2.0, %v283_v24 }
  0xe8   :  { %v330_v25 = vmul.f32 %v961_v13, %v282_v16 }
  0xe9   :  { %964 = vrcp.f32 %v299_v26 }
  0xea   :  { %v963_v28 = vpop.eup %962  ;;  %v346_v31 = vmul.f32 %v330_v25, %v202_v53 }
  0xeb   :  { %v268_v14 = vadd.f32 2.0, %v963_v28 }
  0xec   :  { %v357_v32 = vpack.c.bf16 %v346_v31, %v345_v29 }
  0xed   :  { %v284_v33 = vmul.f32 %v963_v28, %v268_v14 }
  0xee   :  { %874 = vmatmul.msk.bf16.gmra.mxu2 %vm91_vm1, %v357_v32  ;;  %v490_v18 = vpop.f32.mrf.mxu3 }
  0xef   :  { %v300_v34 = vadd.f32 2.0, %v284_v33  ;;  %v965_v35 = vpop.eup %964 }
  0xf0   :  { %v331_v36 = vmul.f32 %v965_v35, %v283_v24 }
  0xf1   :  { %966 = vrcp.f32 %v300_v34 }
  0xf2   :  { %v347_v40 = vmul.f32 %v331_v36, %v203_v63 }
  0xf6   :  { %v1285_v46 = vpop.f32.mrf.mxu3 }
  0xf7   :  { %v967_v57 = vpop.eup %966 }
  0xf8   :  { %v332_v37 = vmul.f32 %v967_v57, %v284_v33 }
  0xfa   :  { %v348_v12 = vmul.f32 %v332_v37, %v204_v17 }
  0xfc   :  { %v358_v41 = vpack.c.bf16 %v348_v12, %v347_v40 }
  0xfe   :  { %875 = vmatmul.msk.bf16.gmra.mxu2 %vm91_vm1, %v358_v41 }
 0x113   :  { %v465_v11 = vpop.f32.mrf.mxu1 }
 0x11b   :  { %v467_v57 = vpop.f32.mrf.mxu1 }
 0x131   :  { %v531_v49 = vpop.f32.mrf.mxu2 }
 0x132   :  { %v532_v50 = vadd.f32 %v531_v49, %v455_v44 }
 0x134   :  { %v575_v52 = vmul.f32 %v1290_v47, %v532_v50 }
 0x136   :  { %v1299_v53 = vadd.f32 %v1295_v51, %v575_v52 }
 0x137   :  { %v561_v22 = vpop.f32.mrf.mxu3 }
 0x138   :  { %v611_v48 = vmin.f32 %v1299_v53, 20.0  ;;  %v562_v54 = vadd.f32 %v561_v22, %v485_v42 }
 0x139   :  { %v533_v55 = vpop.f32.mrf.mxu2 }
 0x13a   :  { %v627_v58 = vmul.f32 1.442695, %v611_v48  ;;  %v587_v27 = vmul.f32 %v1290_v47, %v562_v54  ;;  %v534_v59 = vadd.f32 %v533_v55, %v457_v45 }
 0x13c   :  { %968 = vpow2.f32 %v627_v58  ;;  %v1304_v60 = vadd.f32 %v1295_v51, %v587_v27  ;;  %v576_v61 = vmul.f32 %v1290_v47, %v534_v59 }
 0x13e   :  { %v623_v63 = vmin.f32 %v1304_v60, 20.0  ;;  %v1309_v0 = vadd.f32 %v1295_v51, %v576_v61 }
 0x13f   :  { %v563_v39 = vpop.f32.mrf.mxu3 }
 0x140   :  { %v651_v1 = vmul.f32 1.442695, %v623_v63  ;;  %v612_v3 = vmin.f32 %v1309_v0, 20.0  ;;  %v564_v4 = vadd.f32 %v563_v39, %v487_v38 }
 0x141   :  { %v536_v5 = vpop.f32.mrf.mxu2 }
 0x142   :  { %v969_v6 = vpop.eup %968  ;;  %970 = vpow2.f32 %v651_v1  ;;  %v629_v7 = vmul.f32 1.442695, %v612_v3  ;;  %v588_v8 = vmul.f32 %v1290_v47, %v564_v4  ;;  %v537_v9 = vadd.f32 %v536_v5, %v460_v30  ;;  %v470_v5 = vpop.f32.mrf.mxu1 }
 0x143   :  { %v659_v10 = vadd.f32 2.0, %v969_v6 }
 0x144   :  { %972 = vpow2.f32 %v629_v7  ;;  %v1314_v15 = vadd.f32 %v1295_v51, %v588_v8  ;;  %v577_v16 = vmul.f32 %v1290_v47, %v537_v9 }
 0x145   :  { %v675_v17 = vmul.f32 %v969_v6, %v659_v10 }
 0x146   :  { %v624_v2 = vmin.f32 %v1314_v15, 20.0  ;;  %v1319_v19 = vadd.f32 %v1295_v51, %v577_v16 }
 0x147   :  { %v691_v20 = vadd.f32 2.0, %v675_v17  ;;  %v566_v21 = vpop.f32.mrf.mxu3 }
 0x148   :  { %v971_v23 = vpop.eup %970  ;;  %v653_v43 = vmul.f32 1.442695, %v624_v2  ;;  %v613_v24 = vmin.f32 %v1319_v19, 20.0  ;;  %v567_v62 = vadd.f32 %v566_v21, %v490_v18 }
 0x149   :  { %974 = vrcp.f32 %v691_v20  ;;  %v671_v13 = vadd.f32 2.0, %v971_v23  ;;  %v538_v25 = vpop.f32.mrf.mxu2 }
 0x14a   :  { %v973_v26 = vpop.eup %972  ;;  %976 = vpow2.f32 %v653_v43  ;;  %v631_v28 = vmul.f32 1.442695, %v613_v24  ;;  %v589_v29 = vmul.f32 %v1290_v47, %v567_v62  ;;  %v539_v31 = vadd.f32 %v538_v25, %v462_v56 }
 0x14b   :  { %v687_v14 = vmul.f32 %v971_v23, %v671_v13  ;;  %v660_v32 = vadd.f32 2.0, %v973_v26 }
 0x14c   :  { %978 = vpow2.f32 %v631_v28  ;;  %v1324_v33 = vadd.f32 %v1295_v51, %v589_v29  ;;  %v578_v34 = vmul.f32 %v1290_v47, %v539_v31 }
 0x14d   :  { %v703_v35 = vadd.f32 2.0, %v687_v14  ;;  %v676_v36 = vmul.f32 %v973_v26, %v660_v32 }
 0x14e   :  { %v625_v37 = vmin.f32 %v1324_v33, 20.0  ;;  %v1329_v40 = vadd.f32 %v1295_v51, %v578_v34 }
 0x14f   :  { %v975_v12 = vpop.eup %974  ;;  %980 = vrcp.f32 %v703_v35  ;;  %v692_v41 = vadd.f32 2.0, %v676_v36  ;;  %v568_v42 = vpop.f32.mrf.mxu3 }
 0x150   :  { %v977_v38 = vpop.eup %976  ;;  %v723_v44 = vmul.f32 %v975_v12, %v675_v17  ;;  %v655_v18 = vmul.f32 1.442695, %v625_v37  ;;  %v614_v45 = vmin.f32 %v1329_v40, 20.0  ;;  %v569_v30 = vadd.f32 %v568_v42, %v1285_v46  ;;  %v472_v35 = vpop.f32.mrf.mxu1 }
 0x151   :  { %982 = vrcp.f32 %v692_v41  ;;  %v672_v49 = vadd.f32 2.0, %v977_v38  ;;  %v541_v50 = vpop.f32.mrf.mxu2 }
 0x152   :  { %v979_v52 = vpop.eup %978  ;;  %v739_v22 = vmul.f32 %v723_v44, %v1299_v53  ;;  %984 = vpow2.f32 %v655_v18  ;;  %v633_v48 = vmul.f32 1.442695, %v614_v45  ;;  %v590_v54 = vmul.f32 %v1290_v47, %v569_v30 }
 0x153   :  { %v688_v55 = vmul.f32 %v977_v38, %v672_v49  ;;  %v661_v56 = vadd.f32 2.0, %v979_v52  ;;  %v542_v58 = vadd.f32 %v541_v50, %v465_v11 }
 0x154   :  { %756 = vst.msk [vmem:[#allocation2] sm:$0xff] %vm755_vm2, %v739_v22  ;;  %986 = vpow2.f32 %v633_v48  ;;  %v1337_v27 = vadd.f32 %v1295_v51, %v590_v54 }
 0x155   :  { %v981_v46 = vpop.eup %980  ;;  %v704_v59 = vadd.f32 2.0, %v688_v55  ;;  %v677_v61 = vmul.f32 %v979_v52, %v661_v56  ;;  %v579_v63 = vmul.f32 %v1290_v47, %v542_v58 }
 0x156   :  { %v735_v39 = vmul.f32 %v981_v46, %v687_v14  ;;  %v626_v53 = vmin.f32 %v1337_v27, 20.0 }
 0x157   :  { %v983_v1 = vpop.eup %982  ;;  %988 = vrcp.f32 %v704_v59  ;;  %v693_v3 = vadd.f32 2.0, %v677_v61  ;;  %v1342_v4 = vadd.f32 %v1295_v51, %v579_v63 }
 0x158   :  { %v985_v6 = vpop.eup %984  ;;  %v751_v7 = vmul.f32 %v735_v39, %v1304_v60  ;;  %v724_v8 = vmul.f32 %v983_v1, %v676_v36  ;;  %v657_v9 = vmul.f32 1.442695, %v626_v53 }
 0x159   :  { %990 = vrcp.f32 %v693_v3  ;;  %v673_v10 = vadd.f32 2.0, %v985_v6  ;;  %v615_v11 = vmin.f32 %v1342_v4, 20.0  ;;  %v543_v16 = vpop.f32.mrf.mxu2 }
 0x15a   :  { %v987_v17 = vpop.eup %986  ;;  %768 = vst.msk [vmem:[#allocation2 + $0x60] sm:$0xff] %vm755_vm2, %v751_v7  ;;  %v740_v2 = vmul.f32 %v724_v8, %v1309_v0  ;;  %992 = vpow2.f32 %v657_v9  ;;  %v544_v20 = vadd.f32 %v543_v16, %v467_v57 }
 0x15b   :  { %v689_v21 = vmul.f32 %v985_v6, %v673_v10  ;;  %v662_v23 = vadd.f32 2.0, %v987_v17  ;;  %v635_v43 = vmul.f32 1.442695, %v615_v11 }
 0x15c   :  { %757 = vst.msk [vmem:[#allocation2 + $0x8] sm:$0xff] %vm755_vm2, %v740_v2  ;;  %v580_v60 = vmul.f32 %v1290_v47, %v544_v20 }
 0x15d   :  { %v989_v24 = vpop.eup %988  ;;  %v705_v62 = vadd.f32 2.0, %v689_v21  ;;  %v678_v13 = vmul.f32 %v987_v17, %v662_v23  ;;  %994 = vpow2.f32 %v635_v43 }
 0x15e   :  { %v736_v25 = vmul.f32 %v989_v24, %v688_v55  ;;  %v1351_v26 = vadd.f32 %v1295_v51, %v580_v60 }
 0x15f   :  { %v991_v28 = vpop.eup %990  ;;  %996 = vrcp.f32 %v705_v62  ;;  %v694_v0 = vadd.f32 2.0, %v678_v13 }
 0x160   :  { %v993_v29 = vpop.eup %992  ;;  %v752_v31 = vmul.f32 %v736_v25, %v1314_v15  ;;  %v725_v14 = vmul.f32 %v991_v28, %v677_v61  ;;  %v616_v32 = vmin.f32 %v1351_v26, 20.0  ;;  %v475_v61 = vpop.f32.mrf.mxu1 }
 0x161   :  { %998 = vrcp.f32 %v694_v0  ;;  %v674_v34 = vadd.f32 2.0, %v993_v29  ;;  %v546_v36 = vpop.f32.mrf.mxu2 }
 0x162   :  { %769 = vst.msk [vmem:[#allocation2 + $0x68] sm:$0xff] %vm755_vm2, %v752_v31  ;;  %v741_v57 = vmul.f32 %v725_v14, %v1319_v19  ;;  %v637_v37 = vmul.f32 1.442695, %v616_v32  ;;  %v547_v12 = vadd.f32 %v546_v36, %v470_v5 }
 0x163   :  { %v995_v41 = vpop.eup %994  ;;  %v690_v42 = vmul.f32 %v993_v29, %v674_v34 }
 0x164   :  { %758 = vst.msk [vmem:[#allocation2 + $0x10] sm:$0xff] %vm755_vm2, %v741_v57  ;;  %v663_v38 = vadd.f32 2.0, %v995_v41  ;;  %1000 = vpow2.f32 %v637_v37  ;;  %v581_v15 = vmul.f32 %v1290_v47, %v547_v12 }
 0x165   :  { %v997_v44 = vpop.eup %996  ;;  %v706_v18 = vadd.f32 2.0, %v690_v42 }
 0x166   :  { %v737_v45 = vmul.f32 %v997_v44, %v689_v21  ;;  %v679_v30 = vmul.f32 %v995_v41, %v663_v38  ;;  %v1360_v49 = vadd.f32 %v1295_v51, %v581_v15 }
 0x167   :  { %v999_v50 = vpop.eup %998  ;;  %1002 = vrcp.f32 %v706_v18 }
 0x168   :  { %v753_v19 = vmul.f32 %v737_v45, %v1324_v33  ;;  %v726_v52 = vmul.f32 %v999_v50, %v678_v13  ;;  %v695_v22 = vadd.f32 2.0, %v679_v30  ;;  %v617_v48 = vmin.f32 %v1360_v49, 20.0  ;;  %v477_v21 = vpop.f32.mrf.mxu1 }
 0x169   :  { %v548_v54 = vpop.f32.mrf.mxu2 }
 0x16a   :  { %v1001_v55 = vpop.eup %1000  ;;  %770 = vst.msk [vmem:[#allocation2 + $0x70] sm:$0xff] %vm755_vm2, %v753_v19  ;;  %v742_v56 = vmul.f32 %v726_v52, %v1329_v40  ;;  %1004 = vrcp.f32 %v695_v22  ;;  %v639_v58 = vmul.f32 1.442695, %v617_v48  ;;  %v549_v46 = vadd.f32 %v548_v54, %v472_v35 }
 0x16b   :  { %v664_v59 = vadd.f32 2.0, %v1001_v55 }
 0x16c   :  { %759 = vst.msk [vmem:[#allocation2 + $0x18] sm:$0xff] %vm755_vm2, %v742_v56  ;;  %1006 = vpow2.f32 %v639_v58  ;;  %v582_v33 = vmul.f32 %v1290_v47, %v549_v46 }
 0x16d   :  { %v1003_v63 = vpop.eup %1002  ;;  %v680_v39 = vmul.f32 %v1001_v55, %v664_v59 }
 0x16e   :  { %v738_v53 = vmul.f32 %v1003_v63, %v690_v42  ;;  %v602_v1 = vadd.f32 %v1295_v51, %v582_v33 }
 0x16f   :  { %v696_v3 = vadd.f32 2.0, %v680_v39 }
 0x170   :  { %v1005_v5 = vpop.eup %1004  ;;  %v754_v6 = vmul.f32 %v738_v53, %v1337_v27  ;;  %v618_v40 = vmin.f32 %v602_v1, 20.0  ;;  %v480_v35 = vpop.f32.mrf.mxu1 }
 0x171   :  { %v727_v7 = vmul.f32 %v1005_v5, %v679_v30  ;;  %1008 = vrcp.f32 %v696_v3  ;;  %v551_v8 = vpop.f32.mrf.mxu2 }
 0x172   :  { %v1007_v9 = vpop.eup %1006  ;;  %771 = vst.msk [vmem:[#allocation2 + $0x78] sm:$0xff] %vm755_vm2, %v754_v6  ;;  %v641_v10 = vmul.f32 1.442695, %v618_v40  ;;  %v552_v11 = vadd.f32 %v551_v8, %v475_v61 }
 0x173   :  { %v743_v16 = vmul.f32 %v727_v7, %v1342_v4  ;;  %v665_v17 = vadd.f32 2.0, %v1007_v9 }
 0x174   :  { %1010 = vpow2.f32 %v641_v10  ;;  %v583_v2 = vmul.f32 %v1290_v47, %v552_v11 }
 0x175   :  { %760 = vst.msk [vmem:[#allocation2 + $0x20] sm:$0xff] %vm755_vm2, %v743_v16  ;;  %v681_v20 = vmul.f32 %v1007_v9, %v665_v17 }
 0x176   :  { %v603_v27 = vadd.f32 %v1295_v51, %v583_v2 }
 0x177   :  { %v1009_v23 = vpop.eup %1008  ;;  %v697_v43 = vadd.f32 2.0, %v681_v20 }
 0x178   :  { %v728_v60 = vmul.f32 %v1009_v23, %v680_v39  ;;  %v619_v24 = vmin.f32 %v603_v27, 20.0  ;;  %v482_v52 = vpop.f32.mrf.mxu1 }
 0x179   :  { %1012 = vrcp.f32 %v697_v43  ;;  %v553_v62 = vpop.f32.mrf.mxu2 }
 0x17a   :  { %v1011_v13 = vpop.eup %1010  ;;  %v744_v25 = vmul.f32 %v728_v60, %v1351_v26  ;;  %v643_v4 = vmul.f32 1.442695, %v619_v24  ;;  %v554_v28 = vadd.f32 %v553_v62, %v477_v21 }
 0x17b   :  { %v666_v0 = vadd.f32 2.0, %v1011_v13 }
 0x17c   :  { %761 = vst.msk [vmem:[#allocation2 + $0x28] sm:$0xff] %vm755_vm2, %v744_v25  ;;  %1014 = vpow2.f32 %v643_v4  ;;  %v584_v29 = vmul.f32 %v1290_v47, %v554_v28 }
 0x17d   :  { %v682_v31 = vmul.f32 %v1011_v13, %v666_v0 }
 0x17e   :  { %v604_v14 = vadd.f32 %v1295_v51, %v584_v29 }
 0x17f   :  { %v1013_v32 = vpop.eup %1012  ;;  %v698_v34 = vadd.f32 2.0, %v682_v31 }
 0x180   :  { %v729_v36 = vmul.f32 %v1013_v32, %v681_v20  ;;  %v620_v57 = vmin.f32 %v604_v14, 20.0 }
 0x181   :  { %1016 = vrcp.f32 %v698_v34  ;;  %v556_v37 = vpop.f32.mrf.mxu2 }
 0x182   :  { %v1015_v12 = vpop.eup %1014  ;;  %v745_v26 = vmul.f32 %v729_v36, %v1360_v49  ;;  %v645_v41 = vmul.f32 1.442695, %v620_v57  ;;  %v557_v42 = vadd.f32 %v556_v37, %v480_v35 }
 0x183   :  { %v667_v38 = vadd.f32 2.0, %v1015_v12 }
 0x184   :  { %762 = vst.msk [vmem:[#allocation2 + $0x30] sm:$0xff] %vm755_vm2, %v745_v26  ;;  %1018 = vpow2.f32 %v645_v41  ;;  %v585_v15 = vmul.f32 %v1290_v47, %v557_v42 }
 0x185   :  { %v683_v44 = vmul.f32 %v1015_v12, %v667_v38 }
 0x186   :  { %v605_v18 = vadd.f32 %v1295_v51, %v585_v15 }
 0x187   :  { %v1017_v45 = vpop.eup %1016  ;;  %v699_v30 = vadd.f32 2.0, %v683_v44 }
 0x188   :  { %v730_v50 = vmul.f32 %v1017_v45, %v682_v31  ;;  %v621_v19 = vmin.f32 %v605_v18, 20.0 }
 0x189   :  { %1020 = vrcp.f32 %v699_v30  ;;  %v558_v22 = vpop.f32.mrf.mxu2 }
 0x18a   :  { %v1019_v48 = vpop.eup %1018  ;;  %v746_v49 = vmul.f32 %v730_v50, %v602_v1  ;;  %v647_v54 = vmul.f32 1.442695, %v621_v19  ;;  %v559_v55 = vadd.f32 %v558_v22, %v482_v52 }
 0x18b   :  { %v668_v56 = vadd.f32 2.0, %v1019_v48 }
 0x18c   :  { %763 = vst.msk [vmem:[#allocation2 + $0x38] sm:$0xff] %vm755_vm2, %v746_v49  ;;  %1022 = vpow2.f32 %v647_v54  ;;  %v586_v58 = vmul.f32 %v1290_v47, %v559_v55 }
 0x18d   :  { %v684_v46 = vmul.f32 %v1019_v48, %v668_v56 }
 0x18e   :  { %v606_v59 = vadd.f32 %v1295_v51, %v586_v58 }
 0x18f   :  { %v1021_v61 = vpop.eup %1020  ;;  %v700_v33 = vadd.f32 2.0, %v684_v46 }
 0x190   :  { %v731_v63 = vmul.f32 %v1021_v61, %v683_v44  ;;  %v622_v39 = vmin.f32 %v606_v59, 20.0 }
 0x191   :  { %1024 = vrcp.f32 %v700_v33 }
 0x192   :  { %v1023_v53 = vpop.eup %1022  ;;  %v747_v3 = vmul.f32 %v731_v63, %v603_v27  ;;  %v649_v5 = vmul.f32 1.442695, %v622_v39 }
 0x193   :  { %v669_v1 = vadd.f32 2.0, %v1023_v53 }
 0x194   :  { %764 = vst.msk [vmem:[#allocation2 + $0x40] sm:$0xff] %vm755_vm2, %v747_v3  ;;  %1026 = vpow2.f32 %v649_v5 }
 0x195   :  { %v685_v6 = vmul.f32 %v1023_v53, %v669_v1 }
 0x197   :  { %v1025_v40 = vpop.eup %1024  ;;  %v701_v7 = vadd.f32 2.0, %v685_v6 }
 0x198   :  { %v732_v8 = vmul.f32 %v1025_v40, %v684_v46 }
 0x199   :  { %1028 = vrcp.f32 %v701_v7 }
 0x19a   :  { %v1027_v47 = vpop.eup %1026  ;;  %v748_v9 = vmul.f32 %v732_v8, %v604_v14 }
 0x19b   :  { %v670_v51 = vadd.f32 2.0, %v1027_v47 }
 0x19c   :  { %765 = vst.msk [vmem:[#allocation2 + $0x48] sm:$0xff] %vm755_vm2, %v748_v9 }
 0x19d   :  { %v686_v10 = vmul.f32 %v1027_v47, %v670_v51 }
 0x19f   :  { %v1029_v11 = vpop.eup %1028  ;;  %v702_v16 = vadd.f32 2.0, %v686_v10 }
 0x1a0   :  { %v733_v17 = vmul.f32 %v1029_v11, %v685_v6 }
 0x1a1   :  { %1030 = vrcp.f32 %v702_v16 }
 0x1a2   :  { %v749_v2 = vmul.f32 %v733_v17, %v605_v18 }
 0x1a4   :  { %766 = vst.msk [vmem:[#allocation2 + $0x50] sm:$0xff] %vm755_vm2, %v749_v2 }
 0x1a7   :  { %v1031_v20 = vpop.eup %1030 }
 0x1a8   :  { %v734_v21 = vmul.f32 %v1031_v20, %v686_v10 }
 0x1aa   :  { %v750_v27 = vmul.f32 %v734_v21, %v606_v59 }
 0x1ac   :  { %767 = vst.msk [vmem:[#allocation2 + $0x58] sm:$0xff] %vm755_vm2, %v750_v27 }
 0x1ad   :  { %784 = dma.vmem_to_hbm [thread:$0]  %s777_s8, 2048, %s779_s28, [#allocation3], %s1059_s29, %s1059_s29, %s1060_s30  }
 0x1ae   :  { %1056 = dma.done.wait [#allocation3], 2048  }
 0x1af   :  { %1057 = vsyncadd [#allocation3], 4294965248 }
 0x1b0   :  { %789 = vsyncpa [#allocation3], 1 }

</bundles_post_ra>
